<compile_context>
chip_gen: v5e
topology: v5e:2x2
jax: 0.10.0
libtpu: 0.0.40
codegen_flags: <defaults>
</compile_context>

<pallas_src>
import numpy as np

import jax
import jax.numpy as jnp
from jax import lax
from jax.experimental import pallas as pl
from jax.experimental.pallas import tpu as pltpu


# ----------------------- banded conv weights (built once in glue) -------------

def _conv1_banded_fused(w1):
    """(8,1,3,3) conv1 weights -> (128, 256) K-fused banded GEMM matrix.

    Operand lanes : [kernel-row-0 image row (30) | row 1 (30) | row 2 (30) | pad].
    Output lanes  : pw*128 + x_pooled*8 + c_out   (pw = W parity of the conv col).
    """
    s = np.zeros((3, 30, 2, 16), np.float32)
    for j in range(3):                    # kernel column
        for pw in range(2):
            for xq in range(14):
                s[j, 2 * xq + pw + j, pw, xq] = 1.0
    bm = jnp.einsum("jwpx,cij->iwpxc", jnp.asarray(s), w1[:, 0],
                    precision=lax.Precision.HIGHEST)          # (3,30,2,16,8)
    bm = bm.reshape(3, 30, 256).reshape(90, 256)
    return jnp.pad(bm, ((0, 38), (0, 0)))                     # (128,256)


def _conv2_banded(w2):
    """(16,8,3,3) conv2 weights -> (3, 128, 256) banded GEMM matrices.

    Rows: x_in*8 + c_in (112 used).  Cols: pw*128 + x_out*16 + c_out (96/half).
    """
    s = np.zeros((3, 16, 2, 8), np.float32)
    for j in range(3):
        for pw in range(2):
            for xq in range(6):
                s[j, 2 * xq + pw + j, pw, xq] = 1.0
    bm = jnp.einsum("jxpq,kcij->ixcpqk", jnp.asarray(s), w2,
                    precision=lax.Precision.HIGHEST)          # (3,16,8,2,8,16)
    return bm.reshape(3, 128, 256)


# --------------------------------- kernel ------------------------------------

def _cnn_fused_kernel(a1_ref, w1_ref, b1_ref, w2_ref, b2_ref,
                      wf1_ref, bf1_ref, wf2_ref, bf2_ref, wf3_ref, bf3_ref,
                      o_ref):
    bt = o_ref.shape[0]
    bf16 = jnp.bfloat16

    def mm(a, b):
        return jnp.dot(a, b, preferred_element_type=jnp.float32)

    # ---- conv1 + bias + ReLU + 2x2 max-pool (single batched GEMM) -----------
    # a1 rows: [even-parity block | odd-parity block], each row = m*bt + b.
    h1 = mm(a1_ref[...], w1_ref[...])                         # (28*bt, 256) f32
    h1e, h1o = h1[:14 * bt], h1[14 * bt:]
    m1 = jnp.maximum(jnp.maximum(h1e[:, :128], h1e[:, 128:]),  # W-pool (lane halves)
                     jnp.maximum(h1o[:, :128], h1o[:, 128:]))  # H-pool (row parity)
    p1 = jnp.maximum(m1 + b1_ref[...], 0.0).astype(bf16)       # (14*bt, 128)

    # ---- conv2: 3 banded GEMMs on aligned sublane-shifted slices of p1 ------
    # p1 row layout is y*bt + b, so "input row y + j" is a slice offset of j*bt.
    h2 = (mm(p1[:12 * bt], w2_ref[0])
          + mm(p1[bt:13 * bt], w2_ref[1])
          + mm(p1[2 * bt:14 * bt], w2_ref[2]))                # (12*bt, 256), row = y*bt+b

    # ---- pool2 + bias + ReLU fused into the 6 batched fc1 partial GEMMs -----
    b2v = b2_ref[...]
    acc = jnp.zeros((bt, 320), jnp.float32)
    for m in range(6):
        blk = h2[2 * m * bt:(2 * m + 2) * bt]                 # rows y=2m then y=2m+1
        hp = jnp.maximum(blk[:bt], blk[bt:])                  # H-pool
        wp = jnp.maximum(hp[:, :128], hp[:, 128:])            # W-pool
        p2m = jnp.maximum(wp + b2v, 0.0).astype(bf16)         # (bt, 128)
        acc = acc + mm(p2m, wf1_ref[m])                       # (bt, 320)

    f1 = jnp.maximum(acc + bf1_ref[...], 0.0).astype(bf16)    # (bt, 320)
    # TODO(synk): nn.Dropout is identity at inference (eval mode); not applied.
    f2 = jnp.maximum(mm(f1, wf2_ref[...]) + bf2_ref[...], 0.0).astype(bf16)  # (bt,128)

    # fc3: padded to 128 lanes; padding bias is -1e30 so log-softmax over 128
    # lanes equals log-softmax over the 10 real logits.
    logits = mm(f2, wf3_ref[...]) + bf3_ref[...]              # (bt, 128)
    mx = jnp.max(logits, axis=-1, keepdims=True)
    lse = jnp.log(jnp.sum(jnp.exp(logits - mx), axis=-1, keepdims=True)) + mx
    o_ref[...] = logits - lse                                 # single lane-dense store


# ------------------------------ kernel wrapper --------------------------------

def _const_spec(shape):
    zeros = (0,) * len(shape)
    return pl.BlockSpec(shape, lambda i: zeros)


def cnn_forward(params, x, *, batch_tile=128):
    """Pallas implementation of CNN.forward (no_maxpool=False, eval mode)."""
    x = x.reshape(-1, 1, 28, 28).astype(jnp.float32)
    B = x.shape[0]

    bt = int(min(batch_tile, -(-B // 8) * 8))
    bt = max(8, (bt // 8) * 8)                 # multiple of 8 (sublane alignment)
    n_tiles = -(-B // bt)
    Bp = n_tiles * bt

    # --- conv1 operand: K-fused banded rows, pooled-y-major / batch-minor ----
    xp = jnp.pad(x[:, 0], ((0, Bp - B), (1, 1), (1, 1)))       # (Bp, 30, 30)

    def band(p):  # p = conv1 output-row parity
        parts = [xp[:, p + j:p + j + 28:2, :] for j in range(3)]   # each (Bp,14,30)
        a = jnp.concatenate(parts, axis=-1)                        # (Bp,14,90)
        a = jnp.pad(a, ((0, 0), (0, 0), (0, 38)))                  # (Bp,14,128)
        a = a.reshape(n_tiles, bt, 14, 128).transpose(0, 2, 1, 3)  # (t,14,bt,128)
        return a.reshape(n_tiles, 14 * bt, 128)                    # row = m*bt + b

    a1 = jnp.concatenate([band(0), band(1)], axis=1).astype(jnp.bfloat16)

    # --- weights (VMEM-resident constants, bf16; biases f32) -----------------
    w1 = _conv1_banded_fused(params["conv1_w"]).astype(jnp.bfloat16)   # (128,256)
    b1 = jnp.concatenate([jnp.tile(params["conv1_b"], 14),
                          jnp.zeros((16,), jnp.float32)]).reshape(1, 128)
    w2 = _conv2_banded(params["conv2_w"]).astype(jnp.bfloat16)         # (3,128,256)
    b2 = jnp.concatenate([jnp.tile(params["conv2_b"], 6),
                          jnp.zeros((32,), jnp.float32)]).reshape(1, 128)

    # fc1 weights permuted from NCHW-flatten order to the kernel's (y, x*16+c) layout
    wf1 = params["fc1_w"].reshape(320, 16, 6, 6).transpose(2, 3, 1, 0)  # (y,x,c,o)
    wf1 = jnp.pad(wf1.reshape(6, 96, 320), ((0, 0), (0, 32), (0, 0)))   # (6,128,320)
    wf1 = wf1.astype(jnp.bfloat16)
    bf1 = params["fc1_b"].reshape(1, 320)
    wf2 = jnp.pad(params["fc2_w"].T, ((0, 0), (0, 8))).astype(jnp.bfloat16)     # (320,128)
    bf2 = jnp.pad(params["fc2_b"], (0, 8)).reshape(1, 128)
    wf3 = jnp.pad(params["fc3_w"].T, ((0, 8), (0, 118))).astype(jnp.bfloat16)   # (128,128)
    bf3 = jnp.concatenate([params["fc3_b"],
                           jnp.full((118,), -1e30, jnp.float32)]).reshape(1, 128)

    out = pl.pallas_call(
        _cnn_fused_kernel,
        out_shape=jax.ShapeDtypeStruct((n_tiles, bt, 128), jnp.float32),
        grid=(n_tiles,),
        in_specs=[
            pl.BlockSpec((None, 28 * bt, 128), lambda i: (i, 0, 0)),   # a1 tile
            _const_spec((128, 256)),        # conv1 banded (K-fused)
            _const_spec((1, 128)),          # conv1 bias tile
            _const_spec((3, 128, 256)),     # conv2 banded
            _const_spec((1, 128)),          # conv2 bias tile
            _const_spec((6, 128, 320)),     # fc1 weights (per pooled-y row)
            _const_spec((1, 320)),          # fc1 bias
            _const_spec((320, 128)),        # fc2 weights (padded)
            _const_spec((1, 128)),          # fc2 bias (padded)
            _const_spec((128, 128)),        # fc3 weights (padded)
            _const_spec((1, 128)),          # fc3 bias (padding lanes = -1e30)
        ],
        out_specs=pl.BlockSpec((None, bt, 128), lambda i: (i, 0, 0)),
        compiler_params=pltpu.CompilerParams(
            dimension_semantics=("parallel",),
            vmem_limit_bytes=32 * 1024 * 1024),
        cost_estimate=pl.CostEstimate(
            flops=5_000_000 * Bp,
            transcendentals=130 * Bp,
            bytes_accessed=1_000_000 * n_tiles + 8_000 * Bp),
    )(a1, w1, b1, w2, b2, wf1, bf1, wf2, bf2, wf3, bf3)

    return out.reshape(Bp, 128)[:B, :10]


# ------------------------ parameters & pure-JAX reference --------------------

def init_params(key):
    def unif(k, shape, fan_in):
        bound = 1.0 / float(fan_in) ** 0.5
        return jax.random.uniform(k, shape, jnp.float32, -bound, bound)

    ks = jax.random.split(key, 10)
    return {
        "conv1_w": unif(ks[0], (8, 1, 3, 3), 1 * 3 * 3),
        "conv1_b": unif(ks[1], (8,), 1 * 3 * 3),
        "conv2_w": unif(ks[2], (16, 8, 3, 3), 8 * 3 * 3),
        "conv2_b": unif(ks[3], (16,), 8 * 3 * 3),
        "fc1_w": unif(ks[4], (320, 576), 576),
        "fc1_b": unif(ks[5], (320,), 576),
        "fc2_w": unif(ks[6], (120, 320), 320),
        "fc2_b": unif(ks[7], (120,), 320),
        "fc3_w": unif(ks[8], (10, 120), 120),
        "fc3_b": unif(ks[9], (10,), 120),
    }


def reference_forward(params, x):
    """Pure-JAX (XLA, fp32) reference mirroring the PyTorch forward."""
    x = x.reshape(-1, 1, 28, 28).astype(jnp.float32)
    dn = ("NCHW", "OIHW", "NCHW")
    h = lax.conv_general_dilated(x, params["conv1_w"], (1, 1),
                                 ((1, 1), (1, 1)), dimension_numbers=dn,
                                 precision=lax.Precision.HIGHEST)
    h = jax.nn.relu(h + params["conv1_b"][None, :, None, None])
    h = lax.reduce_window(h, -jnp.inf, lax.max, (1, 1, 2, 2), (1, 1, 2, 2), "VALID")
    h = lax.conv_general_dilated(h, params["conv2_w"], (1, 1),
                                 ((0, 0), (0, 0)), dimension_numbers=dn,
                                 precision=lax.Precision.HIGHEST)
    h = jax.nn.relu(h + params["conv2_b"][None, :, None, None])
    h = lax.reduce_window(h, -jnp.inf, lax.max, (1, 1, 2, 2), (1, 1, 2, 2), "VALID")
    h = h.reshape(h.shape[0], -1)
    h = jax.nn.relu(jnp.dot(h, params["fc1_w"].T, precision=lax.Precision.HIGHEST)
                    + params["fc1_b"])
    h = jax.nn.relu(jnp.dot(h, params["fc2_w"].T, precision=lax.Precision.HIGHEST)
                    + params["fc2_b"])
    logits = jnp.dot(h, params["fc3_w"].T, precision=lax.Precision.HIGHEST) \
        + params["fc3_b"]
    return jax.nn.log_softmax(logits, axis=1)


# ---------------------------------- main --------------------------------------

if __name__ == "__main__":
    key = jax.random.PRNGKey(0)
    pkey, xkey = jax.random.split(key)
    params = init_params(pkey)

    fwd = jax.jit(cnn_forward)

    # MNIST-like input, batch=2 (the forward implies 1x28x28 images)
    x = jax.random.normal(xkey, (2, 1, 28, 28), jnp.float32)
    out = jax.block_until_ready(fwd(params, x))
    assert out.shape == (2, 10) and out.dtype == jnp.float32
    ref = reference_forward(params, x)
    err = float(jnp.max(jnp.abs(out - ref)))
    # GEMMs use bf16 inputs / f32 accumulation, so ~1e-3-level deviation from the
    # fp32 reference is expected.
    assert err < 2.5e-2, f"mismatch vs reference (B=2): {err}"

    # Larger batch exercising a multi-step ("parallel") grid.
    x2 = jax.random.normal(jax.random.PRNGKey(1), (200, 1, 28, 28), jnp.float32)
    out2 = jax.block_until_ready(fwd(params, x2))
    assert out2.shape == (200, 10)
    ref2 = reference_forward(params, x2)
    err2 = float(jnp.max(jnp.abs(out2 - ref2)))
    assert err2 < 2.5e-2, f"mismatch vs reference (B=200): {err2}"

    print("KERNEL_OK")
</pallas_src>

<mosaic_0001>
module attributes {stable_mosaic.version = 11 : i64} {
  func.func @_cnn_fused_kernel(%arg0: i32, %arg1: memref<1x224x128xbf16, #tpu.memory_space<vmem>>, %arg2: memref<128x256xbf16, #tpu.memory_space<vmem>>, %arg3: memref<1x128xf32, #tpu.memory_space<vmem>>, %arg4: memref<3x128x256xbf16, #tpu.memory_space<vmem>>, %arg5: memref<1x128xf32, #tpu.memory_space<vmem>>, %arg6: memref<6x128x320xbf16, #tpu.memory_space<vmem>>, %arg7: memref<1x320xf32, #tpu.memory_space<vmem>>, %arg8: memref<320x128xbf16, #tpu.memory_space<vmem>>, %arg9: memref<1x128xf32, #tpu.memory_space<vmem>>, %arg10: memref<128x128xbf16, #tpu.memory_space<vmem>>, %arg11: memref<1x128xf32, #tpu.memory_space<vmem>>, %arg12: memref<1x8x128xf32, #tpu.memory_space<vmem>>) attributes {dimension_semantics = [#tpu.dimension_semantics<parallel>], iteration_bounds = array<i64: 1>, scalar_prefetch = 0 : i64, scratch_operands = 0 : i64, tpu.core_type = #tpu.core_type<tc>, window_params = [{transform_indices = @transform_0, window_bounds = array<i64: 1, 224, 128>}, {pipeline_mode = #tpu.pipeline_mode<synchronous>, transform_indices = @transform_1, window_bounds = array<i64: 128, 256>}, {pipeline_mode = #tpu.pipeline_mode<synchronous>, transform_indices = @transform_2, window_bounds = array<i64: 1, 128>}, {pipeline_mode = #tpu.pipeline_mode<synchronous>, transform_indices = @transform_3, window_bounds = array<i64: 3, 128, 256>}, {pipeline_mode = #tpu.pipeline_mode<synchronous>, transform_indices = @transform_4, window_bounds = array<i64: 1, 128>}, {pipeline_mode = #tpu.pipeline_mode<synchronous>, transform_indices = @transform_5, window_bounds = array<i64: 6, 128, 320>}, {pipeline_mode = #tpu.pipeline_mode<synchronous>, transform_indices = @transform_6, window_bounds = array<i64: 1, 320>}, {pipeline_mode = #tpu.pipeline_mode<synchronous>, transform_indices = @transform_7, window_bounds = array<i64: 320, 128>}, {pipeline_mode = #tpu.pipeline_mode<synchronous>, transform_indices = @transform_8, window_bounds = array<i64: 1, 128>}, {pipeline_mode = #tpu.pipeline_mode<synchronous>, transform_indices = @transform_9, window_bounds = array<i64: 128, 128>}, {pipeline_mode = #tpu.pipeline_mode<synchronous>, transform_indices = @transform_10, window_bounds = array<i64: 1, 128>}, {transform_indices = @transform_11, window_bounds = array<i64: 1, 8, 128>}]} {
    %c0 = arith.constant 0 : index
    %c0_0 = arith.constant 0 : index
    %c0_1 = arith.constant 0 : index
    %0 = vector.load %arg1[%c0, %c0_0, %c0_1] : memref<1x224x128xbf16, #tpu.memory_space<vmem>>, vector<1x224x128xbf16>
    %1 = vector.shape_cast %0 : vector<1x224x128xbf16> to vector<224x128xbf16>
    %c0_2 = arith.constant 0 : index
    %c0_3 = arith.constant 0 : index
    %2 = vector.load %arg2[%c0_2, %c0_3] : memref<128x256xbf16, #tpu.memory_space<vmem>>, vector<128x256xbf16>
    %cst = arith.constant dense<0.000000e+00> : vector<224x256xf32>
    %3 = tpu.matmul %1, %2, %cst {dimension_numbers = #tpu.dot_dimension_numbers<[1], [0], [0], [1], [0, 0, 1, 1], [], []>} : vector<224x128xbf16>, vector<128x256xbf16>, vector<224x256xf32> -> vector<224x256xf32>
    %4 = vector.extract_strided_slice %3 {offsets = [0, 0], sizes = [112, 256], strides = [1, 1]} : vector<224x256xf32> to vector<112x256xf32>
    %5 = vector.extract_strided_slice %3 {offsets = [112, 0], sizes = [112, 256], strides = [1, 1]} : vector<224x256xf32> to vector<112x256xf32>
    %6 = vector.extract_strided_slice %4 {offsets = [0, 0], sizes = [112, 128], strides = [1, 1]} : vector<112x256xf32> to vector<112x128xf32>
    %7 = vector.extract_strided_slice %4 {offsets = [0, 128], sizes = [112, 128], strides = [1, 1]} : vector<112x256xf32> to vector<112x128xf32>
    %8 = arith.maximumf %6, %7 : vector<112x128xf32>
    %9 = vector.extract_strided_slice %5 {offsets = [0, 0], sizes = [112, 128], strides = [1, 1]} : vector<112x256xf32> to vector<112x128xf32>
    %10 = vector.extract_strided_slice %5 {offsets = [0, 128], sizes = [112, 128], strides = [1, 1]} : vector<112x256xf32> to vector<112x128xf32>
    %11 = arith.maximumf %9, %10 : vector<112x128xf32>
    %12 = arith.maximumf %8, %11 : vector<112x128xf32>
    %c0_4 = arith.constant 0 : index
    %c0_5 = arith.constant 0 : index
    %13 = vector.load %arg3[%c0_4, %c0_5] : memref<1x128xf32, #tpu.memory_space<vmem>>, vector<1x128xf32>
    %14 = vector.broadcast %13 : vector<1x128xf32> to vector<112x128xf32>
    %15 = arith.addf %12, %14 : vector<112x128xf32>
    %cst_6 = arith.constant 0.000000e+00 : f32
    %16 = vector.broadcast %cst_6 : f32 to vector<112x128xf32>
    %17 = arith.maximumf %15, %16 : vector<112x128xf32>
    %18 = arith.truncf %17 : vector<112x128xf32> to vector<112x128xbf16>
    %19 = vector.extract_strided_slice %18 {offsets = [0, 0], sizes = [96, 128], strides = [1, 1]} : vector<112x128xbf16> to vector<96x128xbf16>
    %c0_7 = arith.constant 0 : index
    %c0_8 = arith.constant 0 : index
    %c0_9 = arith.constant 0 : index
    %20 = vector.load %arg4[%c0_7, %c0_8, %c0_9] : memref<3x128x256xbf16, #tpu.memory_space<vmem>>, vector<1x128x256xbf16>
    %21 = vector.shape_cast %20 : vector<1x128x256xbf16> to vector<128x256xbf16>
    %cst_10 = arith.constant dense<0.000000e+00> : vector<96x256xf32>
    %22 = tpu.matmul %19, %21, %cst_10 {dimension_numbers = #tpu.dot_dimension_numbers<[1], [0], [0], [1], [0, 0, 1, 1], [], []>} : vector<96x128xbf16>, vector<128x256xbf16>, vector<96x256xf32> -> vector<96x256xf32>
    %23 = vector.extract_strided_slice %18 {offsets = [8, 0], sizes = [96, 128], strides = [1, 1]} : vector<112x128xbf16> to vector<96x128xbf16>
    %c1 = arith.constant 1 : index
    %c0_11 = arith.constant 0 : index
    %c0_12 = arith.constant 0 : index
    %24 = vector.load %arg4[%c1, %c0_11, %c0_12] : memref<3x128x256xbf16, #tpu.memory_space<vmem>>, vector<1x128x256xbf16>
    %25 = vector.shape_cast %24 : vector<1x128x256xbf16> to vector<128x256xbf16>
    %cst_13 = arith.constant dense<0.000000e+00> : vector<96x256xf32>
    %26 = tpu.matmul %23, %25, %cst_13 {dimension_numbers = #tpu.dot_dimension_numbers<[1], [0], [0], [1], [0, 0, 1, 1], [], []>} : vector<96x128xbf16>, vector<128x256xbf16>, vector<96x256xf32> -> vector<96x256xf32>
    %27 = arith.addf %22, %26 : vector<96x256xf32>
    %28 = vector.extract_strided_slice %18 {offsets = [16, 0], sizes = [96, 128], strides = [1, 1]} : vector<112x128xbf16> to vector<96x128xbf16>
    %c2 = arith.constant 2 : index
    %c0_14 = arith.constant 0 : index
    %c0_15 = arith.constant 0 : index
    %29 = vector.load %arg4[%c2, %c0_14, %c0_15] : memref<3x128x256xbf16, #tpu.memory_space<vmem>>, vector<1x128x256xbf16>
    %30 = vector.shape_cast %29 : vector<1x128x256xbf16> to vector<128x256xbf16>
    %cst_16 = arith.constant dense<0.000000e+00> : vector<96x256xf32>
    %31 = tpu.matmul %28, %30, %cst_16 {dimension_numbers = #tpu.dot_dimension_numbers<[1], [0], [0], [1], [0, 0, 1, 1], [], []>} : vector<96x128xbf16>, vector<128x256xbf16>, vector<96x256xf32> -> vector<96x256xf32>
    %32 = arith.addf %27, %31 : vector<96x256xf32>
    %c0_17 = arith.constant 0 : index
    %c0_18 = arith.constant 0 : index
    %33 = vector.load %arg5[%c0_17, %c0_18] : memref<1x128xf32, #tpu.memory_space<vmem>>, vector<1x128xf32>
    %cst_19 = arith.constant 0.000000e+00 : f32
    %34 = vector.broadcast %cst_19 : f32 to vector<8x320xf32>
    %35 = vector.extract_strided_slice %32 {offsets = [0, 0], sizes = [16, 256], strides = [1, 1]} : vector<96x256xf32> to vector<16x256xf32>
    %36 = vector.extract_strided_slice %35 {offsets = [0, 0], sizes = [8, 256], strides = [1, 1]} : vector<16x256xf32> to vector<8x256xf32>
    %37 = vector.extract_strided_slice %35 {offsets = [8, 0], sizes = [8, 256], strides = [1, 1]} : vector<16x256xf32> to vector<8x256xf32>
    %38 = arith.maximumf %36, %37 : vector<8x256xf32>
    %39 = vector.extract_strided_slice %38 {offsets = [0, 0], sizes = [8, 128], strides = [1, 1]} : vector<8x256xf32> to vector<8x128xf32>
    %40 = vector.extract_strided_slice %38 {offsets = [0, 128], sizes = [8, 128], strides = [1, 1]} : vector<8x256xf32> to vector<8x128xf32>
    %41 = arith.maximumf %39, %40 : vector<8x128xf32>
    %42 = vector.broadcast %33 : vector<1x128xf32> to vector<8x128xf32>
    %43 = arith.addf %41, %42 : vector<8x128xf32>
    %cst_20 = arith.constant 0.000000e+00 : f32
    %44 = vector.broadcast %cst_20 : f32 to vector<8x128xf32>
    %45 = arith.maximumf %43, %44 : vector<8x128xf32>
    %46 = arith.truncf %45 : vector<8x128xf32> to vector<8x128xbf16>
    %c0_21 = arith.constant 0 : index
    %c0_22 = arith.constant 0 : index
    %c0_23 = arith.constant 0 : index
    %47 = vector.load %arg6[%c0_21, %c0_22, %c0_23] : memref<6x128x320xbf16, #tpu.memory_space<vmem>>, vector<1x128x320xbf16>
    %48 = vector.shape_cast %47 : vector<1x128x320xbf16> to vector<128x320xbf16>
    %cst_24 = arith.constant dense<0.000000e+00> : vector<8x320xf32>
    %49 = tpu.matmul %46, %48, %cst_24 {dimension_numbers = #tpu.dot_dimension_numbers<[1], [0], [0], [1], [0, 0, 1, 1], [], []>} : vector<8x128xbf16>, vector<128x320xbf16>, vector<8x320xf32> -> vector<8x320xf32>
    %50 = arith.addf %34, %49 : vector<8x320xf32>
    %51 = vector.extract_strided_slice %32 {offsets = [16, 0], sizes = [16, 256], strides = [1, 1]} : vector<96x256xf32> to vector<16x256xf32>
    %52 = vector.extract_strided_slice %51 {offsets = [0, 0], sizes = [8, 256], strides = [1, 1]} : vector<16x256xf32> to vector<8x256xf32>
    %53 = vector.extract_strided_slice %51 {offsets = [8, 0], sizes = [8, 256], strides = [1, 1]} : vector<16x256xf32> to vector<8x256xf32>
    %54 = arith.maximumf %52, %53 : vector<8x256xf32>
    %55 = vector.extract_strided_slice %54 {offsets = [0, 0], sizes = [8, 128], strides = [1, 1]} : vector<8x256xf32> to vector<8x128xf32>
    %56 = vector.extract_strided_slice %54 {offsets = [0, 128], sizes = [8, 128], strides = [1, 1]} : vector<8x256xf32> to vector<8x128xf32>
    %57 = arith.maximumf %55, %56 : vector<8x128xf32>
    %58 = vector.broadcast %33 : vector<1x128xf32> to vector<8x128xf32>
    %59 = arith.addf %57, %58 : vector<8x128xf32>
    %cst_25 = arith.constant 0.000000e+00 : f32
    %60 = vector.broadcast %cst_25 : f32 to vector<8x128xf32>
    %61 = arith.maximumf %59, %60 : vector<8x128xf32>
    %62 = arith.truncf %61 : vector<8x128xf32> to vector<8x128xbf16>
    %c1_26 = arith.constant 1 : index
    %c0_27 = arith.constant 0 : index
    %c0_28 = arith.constant 0 : index
    %63 = vector.load %arg6[%c1_26, %c0_27, %c0_28] : memref<6x128x320xbf16, #tpu.memory_space<vmem>>, vector<1x128x320xbf16>
    %64 = vector.shape_cast %63 : vector<1x128x320xbf16> to vector<128x320xbf16>
    %cst_29 = arith.constant dense<0.000000e+00> : vector<8x320xf32>
    %65 = tpu.matmul %62, %64, %cst_29 {dimension_numbers = #tpu.dot_dimension_numbers<[1], [0], [0], [1], [0, 0, 1, 1], [], []>} : vector<8x128xbf16>, vector<128x320xbf16>, vector<8x320xf32> -> vector<8x320xf32>
    %66 = arith.addf %50, %65 : vector<8x320xf32>
    %67 = vector.extract_strided_slice %32 {offsets = [32, 0], sizes = [16, 256], strides = [1, 1]} : vector<96x256xf32> to vector<16x256xf32>
    %68 = vector.extract_strided_slice %67 {offsets = [0, 0], sizes = [8, 256], strides = [1, 1]} : vector<16x256xf32> to vector<8x256xf32>
    %69 = vector.extract_strided_slice %67 {offsets = [8, 0], sizes = [8, 256], strides = [1, 1]} : vector<16x256xf32> to vector<8x256xf32>
    %70 = arith.maximumf %68, %69 : vector<8x256xf32>
    %71 = vector.extract_strided_slice %70 {offsets = [0, 0], sizes = [8, 128], strides = [1, 1]} : vector<8x256xf32> to vector<8x128xf32>
    %72 = vector.extract_strided_slice %70 {offsets = [0, 128], sizes = [8, 128], strides = [1, 1]} : vector<8x256xf32> to vector<8x128xf32>
    %73 = arith.maximumf %71, %72 : vector<8x128xf32>
    %74 = vector.broadcast %33 : vector<1x128xf32> to vector<8x128xf32>
    %75 = arith.addf %73, %74 : vector<8x128xf32>
    %cst_30 = arith.constant 0.000000e+00 : f32
    %76 = vector.broadcast %cst_30 : f32 to vector<8x128xf32>
    %77 = arith.maximumf %75, %76 : vector<8x128xf32>
    %78 = arith.truncf %77 : vector<8x128xf32> to vector<8x128xbf16>
    %c2_31 = arith.constant 2 : index
    %c0_32 = arith.constant 0 : index
    %c0_33 = arith.constant 0 : index
    %79 = vector.load %arg6[%c2_31, %c0_32, %c0_33] : memref<6x128x320xbf16, #tpu.memory_space<vmem>>, vector<1x128x320xbf16>
    %80 = vector.shape_cast %79 : vector<1x128x320xbf16> to vector<128x320xbf16>
    %cst_34 = arith.constant dense<0.000000e+00> : vector<8x320xf32>
    %81 = tpu.matmul %78, %80, %cst_34 {dimension_numbers = #tpu.dot_dimension_numbers<[1], [0], [0], [1], [0, 0, 1, 1], [], []>} : vector<8x128xbf16>, vector<128x320xbf16>, vector<8x320xf32> -> vector<8x320xf32>
    %82 = arith.addf %66, %81 : vector<8x320xf32>
    %83 = vector.extract_strided_slice %32 {offsets = [48, 0], sizes = [16, 256], strides = [1, 1]} : vector<96x256xf32> to vector<16x256xf32>
    %84 = vector.extract_strided_slice %83 {offsets = [0, 0], sizes = [8, 256], strides = [1, 1]} : vector<16x256xf32> to vector<8x256xf32>
    %85 = vector.extract_strided_slice %83 {offsets = [8, 0], sizes = [8, 256], strides = [1, 1]} : vector<16x256xf32> to vector<8x256xf32>
    %86 = arith.maximumf %84, %85 : vector<8x256xf32>
    %87 = vector.extract_strided_slice %86 {offsets = [0, 0], sizes = [8, 128], strides = [1, 1]} : vector<8x256xf32> to vector<8x128xf32>
    %88 = vector.extract_strided_slice %86 {offsets = [0, 128], sizes = [8, 128], strides = [1, 1]} : vector<8x256xf32> to vector<8x128xf32>
    %89 = arith.maximumf %87, %88 : vector<8x128xf32>
    %90 = vector.broadcast %33 : vector<1x128xf32> to vector<8x128xf32>
    %91 = arith.addf %89, %90 : vector<8x128xf32>
    %cst_35 = arith.constant 0.000000e+00 : f32
    %92 = vector.broadcast %cst_35 : f32 to vector<8x128xf32>
    %93 = arith.maximumf %91, %92 : vector<8x128xf32>
    %94 = arith.truncf %93 : vector<8x128xf32> to vector<8x128xbf16>
    %c3 = arith.constant 3 : index
    %c0_36 = arith.constant 0 : index
    %c0_37 = arith.constant 0 : index
    %95 = vector.load %arg6[%c3, %c0_36, %c0_37] : memref<6x128x320xbf16, #tpu.memory_space<vmem>>, vector<1x128x320xbf16>
    %96 = vector.shape_cast %95 : vector<1x128x320xbf16> to vector<128x320xbf16>
    %cst_38 = arith.constant dense<0.000000e+00> : vector<8x320xf32>
    %97 = tpu.matmul %94, %96, %cst_38 {dimension_numbers = #tpu.dot_dimension_numbers<[1], [0], [0], [1], [0, 0, 1, 1], [], []>} : vector<8x128xbf16>, vector<128x320xbf16>, vector<8x320xf32> -> vector<8x320xf32>
    %98 = arith.addf %82, %97 : vector<8x320xf32>
    %99 = vector.extract_strided_slice %32 {offsets = [64, 0], sizes = [16, 256], strides = [1, 1]} : vector<96x256xf32> to vector<16x256xf32>
    %100 = vector.extract_strided_slice %99 {offsets = [0, 0], sizes = [8, 256], strides = [1, 1]} : vector<16x256xf32> to vector<8x256xf32>
    %101 = vector.extract_strided_slice %99 {offsets = [8, 0], sizes = [8, 256], strides = [1, 1]} : vector<16x256xf32> to vector<8x256xf32>
    %102 = arith.maximumf %100, %101 : vector<8x256xf32>
    %103 = vector.extract_strided_slice %102 {offsets = [0, 0], sizes = [8, 128], strides = [1, 1]} : vector<8x256xf32> to vector<8x128xf32>
    %104 = vector.extract_strided_slice %102 {offsets = [0, 128], sizes = [8, 128], strides = [1, 1]} : vector<8x256xf32> to vector<8x128xf32>
    %105 = arith.maximumf %103, %104 : vector<8x128xf32>
    %106 = vector.broadcast %33 : vector<1x128xf32> to vector<8x128xf32>
    %107 = arith.addf %105, %106 : vector<8x128xf32>
    %cst_39 = arith.constant 0.000000e+00 : f32
    %108 = vector.broadcast %cst_39 : f32 to vector<8x128xf32>
    %109 = arith.maximumf %107, %108 : vector<8x128xf32>
    %110 = arith.truncf %109 : vector<8x128xf32> to vector<8x128xbf16>
    %c4 = arith.constant 4 : index
    %c0_40 = arith.constant 0 : index
    %c0_41 = arith.constant 0 : index
    %111 = vector.load %arg6[%c4, %c0_40, %c0_41] : memref<6x128x320xbf16, #tpu.memory_space<vmem>>, vector<1x128x320xbf16>
    %112 = vector.shape_cast %111 : vector<1x128x320xbf16> to vector<128x320xbf16>
    %cst_42 = arith.constant dense<0.000000e+00> : vector<8x320xf32>
    %113 = tpu.matmul %110, %112, %cst_42 {dimension_numbers = #tpu.dot_dimension_numbers<[1], [0], [0], [1], [0, 0, 1, 1], [], []>} : vector<8x128xbf16>, vector<128x320xbf16>, vector<8x320xf32> -> vector<8x320xf32>
    %114 = arith.addf %98, %113 : vector<8x320xf32>
    %115 = vector.extract_strided_slice %32 {offsets = [80, 0], sizes = [16, 256], strides = [1, 1]} : vector<96x256xf32> to vector<16x256xf32>
    %116 = vector.extract_strided_slice %115 {offsets = [0, 0], sizes = [8, 256], strides = [1, 1]} : vector<16x256xf32> to vector<8x256xf32>
    %117 = vector.extract_strided_slice %115 {offsets = [8, 0], sizes = [8, 256], strides = [1, 1]} : vector<16x256xf32> to vector<8x256xf32>
    %118 = arith.maximumf %116, %117 : vector<8x256xf32>
    %119 = vector.extract_strided_slice %118 {offsets = [0, 0], sizes = [8, 128], strides = [1, 1]} : vector<8x256xf32> to vector<8x128xf32>
    %120 = vector.extract_strided_slice %118 {offsets = [0, 128], sizes = [8, 128], strides = [1, 1]} : vector<8x256xf32> to vector<8x128xf32>
    %121 = arith.maximumf %119, %120 : vector<8x128xf32>
    %122 = vector.broadcast %33 : vector<1x128xf32> to vector<8x128xf32>
    %123 = arith.addf %121, %122 : vector<8x128xf32>
    %cst_43 = arith.constant 0.000000e+00 : f32
    %124 = vector.broadcast %cst_43 : f32 to vector<8x128xf32>
    %125 = arith.maximumf %123, %124 : vector<8x128xf32>
    %126 = arith.truncf %125 : vector<8x128xf32> to vector<8x128xbf16>
    %c5 = arith.constant 5 : index
    %c0_44 = arith.constant 0 : index
    %c0_45 = arith.constant 0 : index
    %127 = vector.load %arg6[%c5, %c0_44, %c0_45] : memref<6x128x320xbf16, #tpu.memory_space<vmem>>, vector<1x128x320xbf16>
    %128 = vector.shape_cast %127 : vector<1x128x320xbf16> to vector<128x320xbf16>
    %cst_46 = arith.constant dense<0.000000e+00> : vector<8x320xf32>
    %129 = tpu.matmul %126, %128, %cst_46 {dimension_numbers = #tpu.dot_dimension_numbers<[1], [0], [0], [1], [0, 0, 1, 1], [], []>} : vector<8x128xbf16>, vector<128x320xbf16>, vector<8x320xf32> -> vector<8x320xf32>
    %130 = arith.addf %114, %129 : vector<8x320xf32>
    %c0_47 = arith.constant 0 : index
    %c0_48 = arith.constant 0 : index
    %131 = vector.load %arg7[%c0_47, %c0_48] : memref<1x320xf32, #tpu.memory_space<vmem>>, vector<1x320xf32>
    %132 = vector.broadcast %131 : vector<1x320xf32> to vector<8x320xf32>
    %133 = arith.addf %130, %132 : vector<8x320xf32>
    %cst_49 = arith.constant 0.000000e+00 : f32
    %134 = vector.broadcast %cst_49 : f32 to vector<8x320xf32>
    %135 = arith.maximumf %133, %134 : vector<8x320xf32>
    %136 = arith.truncf %135 : vector<8x320xf32> to vector<8x320xbf16>
    %c0_50 = arith.constant 0 : index
    %c0_51 = arith.constant 0 : index
    %137 = vector.load %arg8[%c0_50, %c0_51] : memref<320x128xbf16, #tpu.memory_space<vmem>>, vector<320x128xbf16>
    %cst_52 = arith.constant dense<0.000000e+00> : vector<8x128xf32>
    %138 = tpu.matmul %136, %137, %cst_52 {dimension_numbers = #tpu.dot_dimension_numbers<[1], [0], [0], [1], [0, 0, 1, 1], [], []>} : vector<8x320xbf16>, vector<320x128xbf16>, vector<8x128xf32> -> vector<8x128xf32>
    %c0_53 = arith.constant 0 : index
    %c0_54 = arith.constant 0 : index
    %139 = vector.load %arg9[%c0_53, %c0_54] : memref<1x128xf32, #tpu.memory_space<vmem>>, vector<1x128xf32>
    %140 = vector.broadcast %139 : vector<1x128xf32> to vector<8x128xf32>
    %141 = arith.addf %138, %140 : vector<8x128xf32>
    %cst_55 = arith.constant 0.000000e+00 : f32
    %142 = vector.broadcast %cst_55 : f32 to vector<8x128xf32>
    %143 = arith.maximumf %141, %142 : vector<8x128xf32>
    %144 = arith.truncf %143 : vector<8x128xf32> to vector<8x128xbf16>
    %c0_56 = arith.constant 0 : index
    %c0_57 = arith.constant 0 : index
    %145 = vector.load %arg10[%c0_56, %c0_57] : memref<128x128xbf16, #tpu.memory_space<vmem>>, vector<128x128xbf16>
    %cst_58 = arith.constant dense<0.000000e+00> : vector<8x128xf32>
    %146 = tpu.matmul %144, %145, %cst_58 {dimension_numbers = #tpu.dot_dimension_numbers<[1], [0], [0], [1], [0, 0, 1, 1], [], []>} : vector<8x128xbf16>, vector<128x128xbf16>, vector<8x128xf32> -> vector<8x128xf32>
    %c0_59 = arith.constant 0 : index
    %c0_60 = arith.constant 0 : index
    %147 = vector.load %arg11[%c0_59, %c0_60] : memref<1x128xf32, #tpu.memory_space<vmem>>, vector<1x128xf32>
    %148 = vector.broadcast %147 : vector<1x128xf32> to vector<8x128xf32>
    %149 = arith.addf %146, %148 : vector<8x128xf32>
    %cst_61 = arith.constant dense<0xFF800000> : vector<8xf32>
    %150 = vector.multi_reduction <maximumf>, %149, %cst_61 [1] : vector<8x128xf32> to vector<8xf32>
    %151 = vector.shape_cast %150 : vector<8xf32> to vector<8x1xf32>
    %152 = vector.broadcast %151 : vector<8x1xf32> to vector<8x128xf32>
    %153 = arith.subf %149, %152 : vector<8x128xf32>
    %154 = math.exp %153 : vector<8x128xf32>
    %cst_62 = arith.constant dense<0.000000e+00> : vector<8xf32>
    %155 = vector.multi_reduction <add>, %154, %cst_62 [1] : vector<8x128xf32> to vector<8xf32>
    %156 = vector.shape_cast %155 : vector<8xf32> to vector<8x1xf32>
    %157 = math.log %156 : vector<8x1xf32>
    %158 = arith.addf %157, %151 : vector<8x1xf32>
    %159 = vector.broadcast %158 : vector<8x1xf32> to vector<8x128xf32>
    %160 = arith.subf %149, %159 : vector<8x128xf32>
    %c0_63 = arith.constant 0 : index
    %c0_64 = arith.constant 0 : index
    %c0_65 = arith.constant 0 : index
    %161 = vector.load %arg12[%c0_63, %c0_64, %c0_65] : memref<1x8x128xf32, #tpu.memory_space<vmem>>, vector<1x8x128xf32>
    %162 = vector.shape_cast %161 : vector<1x8x128xf32> to vector<8x128xf32>
    %163 = vector.shape_cast %160 : vector<8x128xf32> to vector<1x8x128xf32>
    tpu.vector_store %arg12[%c0_63, %c0_64, %c0_65], %163 {strides = array<i32>} : memref<1x8x128xf32, #tpu.memory_space<vmem>>, vector<1x8x128xf32>,
    return
  }
  func.func @transform_0(%arg0: i32) -> (i32, i32, i32) {
    %c0_i32 = arith.constant 0 : i32
    %c0_i32_0 = arith.constant 0 : i32
    %c0_i32_1 = arith.constant 0 : i32
    return %arg0, %c0_i32, %c0_i32_0 : i32, i32, i32
  }
  func.func @transform_1(%arg0: i32) -> (i32, i32) {
    %c0_i32 = arith.constant 0 : i32
    %c0_i32_0 = arith.constant 0 : i32
    %c0_i32_1 = arith.constant 0 : i32
    return %c0_i32, %c0_i32_0 : i32, i32
  }
  func.func @transform_2(%arg0: i32) -> (i32, i32) {
    %c0_i32 = arith.constant 0 : i32
    %c0_i32_0 = arith.constant 0 : i32
    %c0_i32_1 = arith.constant 0 : i32
    return %c0_i32, %c0_i32_0 : i32, i32
  }
  func.func @transform_3(%arg0: i32) -> (i32, i32, i32) {
    %c0_i32 = arith.constant 0 : i32
    %c0_i32_0 = arith.constant 0 : i32
    %c0_i32_1 = arith.constant 0 : i32
    %c0_i32_2 = arith.constant 0 : i32
    return %c0_i32, %c0_i32_0, %c0_i32_1 : i32, i32, i32
  }
  func.func @transform_4(%arg0: i32) -> (i32, i32) {
    %c0_i32 = arith.constant 0 : i32
    %c0_i32_0 = arith.constant 0 : i32
    %c0_i32_1 = arith.constant 0 : i32
    return %c0_i32, %c0_i32_0 : i32, i32
  }
  func.func @transform_5(%arg0: i32) -> (i32, i32, i32) {
    %c0_i32 = arith.constant 0 : i32
    %c0_i32_0 = arith.constant 0 : i32
    %c0_i32_1 = arith.constant 0 : i32
    %c0_i32_2 = arith.constant 0 : i32
    return %c0_i32, %c0_i32_0, %c0_i32_1 : i32, i32, i32
  }
  func.func @transform_6(%arg0: i32) -> (i32, i32) {
    %c0_i32 = arith.constant 0 : i32
    %c0_i32_0 = arith.constant 0 : i32
    %c0_i32_1 = arith.constant 0 : i32
    return %c0_i32, %c0_i32_0 : i32, i32
  }
  func.func @transform_7(%arg0: i32) -> (i32, i32) {
    %c0_i32 = arith.constant 0 : i32
    %c0_i32_0 = arith.constant 0 : i32
    %c0_i32_1 = arith.constant 0 : i32
    return %c0_i32, %c0_i32_0 : i32, i32
  }
  func.func @transform_8(%arg0: i32) -> (i32, i32) {
    %c0_i32 = arith.constant 0 : i32
    %c0_i32_0 = arith.constant 0 : i32
    %c0_i32_1 = arith.constant 0 : i32
    return %c0_i32, %c0_i32_0 : i32, i32
  }
  func.func @transform_9(%arg0: i32) -> (i32, i32) {
    %c0_i32 = arith.constant 0 : i32
    %c0_i32_0 = arith.constant 0 : i32
    %c0_i32_1 = arith.constant 0 : i32
    return %c0_i32, %c0_i32_0 : i32, i32
  }
  func.func @transform_10(%arg0: i32) -> (i32, i32) {
    %c0_i32 = arith.constant 0 : i32
    %c0_i32_0 = arith.constant 0 : i32
    %c0_i32_1 = arith.constant 0 : i32
    return %c0_i32, %c0_i32_0 : i32, i32
  }
  func.func @transform_11(%arg0: i32) -> (i32, i32, i32) {
    %c0_i32 = arith.constant 0 : i32
    %c0_i32_0 = arith.constant 0 : i32
    %c0_i32_1 = arith.constant 0 : i32
    return %arg0, %c0_i32, %c0_i32_0 : i32, i32, i32
  }
}

</mosaic_0001>

<bundles_post_ra>
// kernel: tile.13
= control target key start
LH: loop header
LB: loop body
LE: loop exit
PB: predicated region body
PF: predicated region fallthrough
CT: control target
= control target key end

     0   :  { %s28_s0 = inlined_call_operand.vmem [shape: f32[8], index: 0, kind: input, shape index: {}]   ;;  %s29_s1 = inlined_call_operand.vmem [shape: f32[14,8], index: 1, kind: output, shape index: {}]  }
   0x1   :  { %v4_v0 = vld [vmem:[%s28_s0] ss:$0 sm:$0xff] }
   0x2   :  { %5 = vst [vmem:[%s29_s1] sm:$0xff] %v4_v0 }
   0x3   :  { %8 = vst [vmem:[%s29_s1 + $0x8] sm:$0xff] %v4_v0 }

// kernel: tile.14
= control target key start
LH: loop header
LB: loop body
LE: loop exit
PB: predicated region body
PF: predicated region fallthrough
CT: control target
= control target key end

     0   :  { %s115_s10 = smov 104   ;;  %s116_s11 = smov 88   ;;  %vm3_vm0 = vcmask 64512   ;;  %vm9_vm1 = vcmask 917312   ;;  %vm15_vm2 = vcmask 851712   ;;  %vm21_vm3 = vcmask 786112   ;;  %s183_s0 = inlined_call_operand.vmem [shape: f32[14,8], index: 0, kind: input, shape index: {}]   ;;  %s184_s1 = inlined_call_operand.vmem [shape: f32[112], index: 1, kind: output, shape index: {}]  }
   0x1   :  { %v89_v0 = vld [vmem:[%s183_s0 + $0xd] sm:$0x1]   ;;  %v91_v1 = vld [vmem:[%s183_s0 + $0xb] sm:$0x1]   ;;  %v93_v2 = vld [vmem:[%s183_s0 + $0x9] sm:$0x1]  }
   0x2   :  { %7 = vrot.lane.b32.xlu0 %v89_v0, %s115_s10  ;;  %19 = vrot.lane.b32.xlu1 %v91_v1, %s116_s11  ;;  %s117_s14 = smov 72   ;;  %v90_v3 = vld [vmem:[%s183_s0 + $0xc] sm:$0x1]   ;;  %v92_v4 = vld [vmem:[%s183_s0 + $0xa] sm:$0x1]   ;;  %s118_s19 = smov 96  }
   0x3   :  { %31 = vrot.lane.b32.xlu2 %v93_v2, %s117_s14  ;;  %s119_s20 = smov 80   ;;  %v94_v5 = vld [vmem:[%s183_s0 + $0x8] sm:$0x1]   ;;  %s120_s23 = smov 64   ;;  %v95_v6 = vld [vmem:[%s183_s0 + $0x7] sm:$0x1]  }
   0x4   :  { %v96_v7 = vld [vmem:[%s183_s0 + $0x6] sm:$0x1]   ;;  %s121_s28 = smov 56   ;;  %s122_s29 = smov 48   ;;  %v97_v8 = vld [vmem:[%s183_s0 + $0x5] sm:$0x1]  }
   0x5   :  { %s123_s3 = smov 40   ;;  %v98_v9 = vld [vmem:[%s183_s0 + $0x4] sm:$0x1]   ;;  %v99_v10 = vld [vmem:[%s183_s0 + $0x3] sm:$0x1]   ;;  %s124_s8 = smov 32  }
   0x6   :  { %s125_s9 = smov 24   ;;  %v100_v11 = vld [vmem:[%s183_s0 + $0x2] sm:$0x1]   ;;  %s126_s12 = smov 16   ;;  %v101_v12 = vld [vmem:[%s183_s0 + $0x1] sm:$0x1]  }
   0x7   :  { %s127_s15 = smov 8   ;;  %v2_v13 = vld [vmem:[%s183_s0] sm:$0x1]   ;;  %vm27_vm4 = vcmask 720512   ;;  %vm33_vm5 = vcmask 654912   ;;  %vm39_vm6 = vcmask 589312  }
   0x8   :  { %4 = vst.msk [vmem:[#allocation0] sm:$0x1] %vm3_vm0, %v2_v13   ;;  %vm45_vm7 = vcmask 523712   ;;  %vm51_vm8 = vcmask 458112   ;;  %vm57_vm9 = vcmask 392512   ;;  %vm63_vm10 = vcmask 326912  }
   0x9   :  { %vm69_vm11 = vcmask 261312   ;;  %vm75_vm12 = vcmask 195712   ;;  %vm81_vm13 = vcmask 130112  }
   0xa   :  { %13 = vrot.lane.b32.xlu0 %v90_v3, %s118_s19  ;;  %25 = vrot.lane.b32.xlu1 %v92_v4, %s119_s20 }
   0xb   :  { %37 = vrot.lane.b32.xlu2 %v94_v5, %s120_s23 }
  0x12   :  { %43 = vrot.lane.b32.xlu0 %v95_v6, %s121_s28  ;;  %49 = vrot.lane.b32.xlu1 %v96_v7, %s122_s29 }
  0x13   :  { %55 = vrot.lane.b32.xlu2 %v97_v8, %s123_s3 }
  0x1a   :  { %61 = vrot.lane.b32.xlu0 %v98_v9, %s124_s8  ;;  %67 = vrot.lane.b32.xlu1 %v99_v10, %s125_s9 }
  0x1b   :  { %73 = vrot.lane.b32.xlu2 %v100_v11, %s126_s12 }
  0x22   :  { %79 = vrot.lane.b32.xlu0 %v101_v12, %s127_s15 }
  0x5d   :  { %v32_v14 = vpop.permute.xlu2 %31  }
  0x65   :  { %v38_v15 = vpop.permute.xlu2 %37  }
  0x6d   :  { %v56_v16 = vpop.permute.xlu2 %55  }
  0x74   :  { %v8_v17 = vpop.permute.xlu0 %7   ;;  %v20_v18 = vpop.permute.xlu1 %19  }
  0x75   :  { %10 = vst.msk [vmem:[#allocation0] sm:$0x1] %vm9_vm1, %v8_v17   ;;  %v74_v19 = vpop.permute.xlu2 %73  }
  0x7c   :  { %v14_v20 = vpop.permute.xlu0 %13   ;;  %v26_v21 = vpop.permute.xlu1 %25  }
  0x7d   :  { %16 = vst.msk [vmem:[#allocation0] sm:$0x1] %vm15_vm2, %v14_v20  }
  0x7e   :  { %22 = vst.msk [vmem:[#allocation0] sm:$0x1] %vm21_vm3, %v20_v18  }
  0x7f   :  { %28 = vst.msk [vmem:[#allocation0] sm:$0x1] %vm27_vm4, %v26_v21  }
  0x80   :  { %34 = vst.msk [vmem:[#allocation0] sm:$0x1] %vm33_vm5, %v32_v14  }
  0x81   :  { %40 = vst.msk [vmem:[#allocation0] sm:$0x1] %vm39_vm6, %v38_v15  }
  0x84   :  { %v44_v22 = vpop.permute.xlu0 %43   ;;  %v50_v23 = vpop.permute.xlu1 %49  }
  0x85   :  { %46 = vst.msk [vmem:[#allocation0] sm:$0x1] %vm45_vm7, %v44_v22  }
  0x86   :  { %52 = vst.msk [vmem:[#allocation0] sm:$0x1] %vm51_vm8, %v50_v23  }
  0x87   :  { %58 = vst.msk [vmem:[#allocation0] sm:$0x1] %vm57_vm9, %v56_v16  }
  0x8c   :  { %v62_v24 = vpop.permute.xlu0 %61   ;;  %v68_v25 = vpop.permute.xlu1 %67  }
  0x8d   :  { %64 = vst.msk [vmem:[#allocation0] sm:$0x1] %vm63_vm10, %v62_v24  }
  0x8e   :  { %70 = vst.msk [vmem:[#allocation0] sm:$0x1] %vm69_vm11, %v68_v25  }
  0x8f   :  { %76 = vst.msk [vmem:[#allocation0] sm:$0x1] %vm75_vm12, %v74_v19  }
  0x94   :  { %v80_v26 = vpop.permute.xlu0 %79  }
  0x95   :  { %82 = vst.msk [vmem:[#allocation0] sm:$0x1] %vm81_vm13, %v80_v26  }
  0x9c   :  { %v85_v27 = vld [vmem:[#allocation0] sm:$0x1] }
  0x9d   :  { %88 = vst [vmem:[%s184_s1] sm:$0x1] %v85_v27 }

// kernel: tile.18
= control target key start
LH: loop header
LB: loop body
LE: loop exit
PB: predicated region body
PF: predicated region fallthrough
CT: control target
= control target key end

     0   :  { %s22_s0 = inlined_call_operand.vmem [shape: f32[16], index: 0, kind: input, shape index: {}]   ;;  %s23_s1 = inlined_call_operand.vmem [shape: f32[6,16], index: 1, kind: output, shape index: {}]  }
   0x1   :  { %v4_v0 = vld [vmem:[%s22_s0] ss:$0 sm:$0xff] }
   0x2   :  { %5 = vst [vmem:[%s23_s1] sm:$0xff] %v4_v0 }

// kernel: tile.19
= control target key start
LH: loop header
LB: loop body
LE: loop exit
PB: predicated region body
PF: predicated region fallthrough
CT: control target
= control target key end

     0   :  { %s51_s10 = smov 80   ;;  %s52_s11 = smov 48   ;;  %vm3_vm0 = vcmask 130048   ;;  %vm9_vm1 = vcmask 786048   ;;  %vm15_vm2 = vcmask 654848   ;;  %vm21_vm3 = vcmask 523648   ;;  %s87_s0 = inlined_call_operand.vmem [shape: f32[6,16], index: 0, kind: input, shape index: {}]   ;;  %s88_s1 = inlined_call_operand.vmem [shape: f32[96], index: 1, kind: output, shape index: {}]  }
   0x1   :  { %v41_v0 = vld [vmem:[%s87_s0 + $0x5] sm:$0x1]   ;;  %v43_v1 = vld [vmem:[%s87_s0 + $0x3] sm:$0x1]   ;;  %v45_v2 = vld [vmem:[%s87_s0 + $0x1] sm:$0x1]  }
   0x2   :  { %7 = vrot.lane.b32.xlu0 %v41_v0, %s51_s10  ;;  %19 = vrot.lane.b32.xlu1 %v43_v1, %s52_s11  ;;  %s53_s14 = smov 16   ;;  %v42_v3 = vld [vmem:[%s87_s0 + $0x4] sm:$0x1]   ;;  %v44_v4 = vld [vmem:[%s87_s0 + $0x2] sm:$0x1]   ;;  %s54_s19 = smov 64  }
   0x3   :  { %31 = vrot.lane.b32.xlu2 %v45_v2, %s53_s14  ;;  %s55_s20 = smov 32   ;;  %v2_v5 = vld [vmem:[%s87_s0] sm:$0x1]   ;;  %vm27_vm4 = vcmask 392448   ;;  %vm33_vm5 = vcmask 261248  }
   0x4   :  { %4 = vst.msk [vmem:[#allocation0] sm:$0x1] %vm3_vm0, %v2_v5  }
   0xa   :  { %13 = vrot.lane.b32.xlu0 %v42_v3, %s54_s19  ;;  %25 = vrot.lane.b32.xlu1 %v44_v4, %s55_s20 }
  0x5d   :  { %v32_v6 = vpop.permute.xlu2 %31  }
  0x74   :  { %v8_v7 = vpop.permute.xlu0 %7   ;;  %v20_v8 = vpop.permute.xlu1 %19  }
  0x75   :  { %10 = vst.msk [vmem:[#allocation0] sm:$0x1] %vm9_vm1, %v8_v7  }
  0x7c   :  { %v14_v9 = vpop.permute.xlu0 %13   ;;  %v26_v10 = vpop.permute.xlu1 %25  }
  0x7d   :  { %16 = vst.msk [vmem:[#allocation0] sm:$0x1] %vm15_vm2, %v14_v9  }
  0x7e   :  { %22 = vst.msk [vmem:[#allocation0] sm:$0x1] %vm21_vm3, %v20_v8  }
  0x7f   :  { %28 = vst.msk [vmem:[#allocation0] sm:$0x1] %vm27_vm4, %v26_v10  }
  0x80   :  { %34 = vst.msk [vmem:[#allocation0] sm:$0x1] %vm33_vm5, %v32_v6  }
  0x87   :  { %v37_v11 = vld [vmem:[#allocation0] sm:$0x1] }
  0x88   :  { %40 = vst [vmem:[%s88_s1] sm:$0x1] %v37_v11 }

// kernel: cnn_forward.1
= control target key start
LH: loop header
LB: loop body
LE: loop exit
PB: predicated region body
PF: predicated region fallthrough
CT: control target
= control target key end

     0   :  { %vm2527_vm0 = vcmask 523264   ;;  %s5931_s1 = inlined_call_operand.vmem [shape: bf16[128,256], index: 1, kind: input, shape index: {}]   ;;  %s5932_s0 = inlined_call_operand.vmem [shape: bf16[1,224,128], index: 0, kind: input, shape index: {}]   ;;  %s5933_s2 = inlined_call_operand.vmem [shape: f32[1,128], index: 2, kind: input, shape index: {}]   ;;  %s5934_s3 = inlined_call_operand.vmem [shape: bf16[3,128,256], index: 3, kind: input, shape index: {}]   ;;  %s5935_s5 = inlined_call_operand.vmem [shape: bf16[6,128,320], index: 5, kind: input, shape index: {}]   ;;  %s5936_s4 = inlined_call_operand.vmem [shape: f32[1,128], index: 4, kind: input, shape index: {}]   ;;  %s5937_s8 = inlined_call_operand.vmem [shape: f32[1,128], index: 8, kind: input, shape index: {}]   ;;  %s5938_s7 = inlined_call_operand.vmem [shape: bf16[320,128], index: 7, kind: input, shape index: {}]   ;;  %s5939_s6 = inlined_call_operand.vmem [shape: f32[1,320], index: 6, kind: input, shape index: {}]   ;;  %s5940_s10 = inlined_call_operand.vmem [shape: f32[1,128], index: 10, kind: input, shape index: {}]   ;;  %s5941_s9 = inlined_call_operand.vmem [shape: bf16[128,128], index: 9, kind: input, shape index: {}]   ;;  %s5942_s11 = inlined_call_operand.vmem [shape: f32[1,8,128], index: 11, kind: output, shape index: {}]  }
   0x1   :  { %v2783_v0 = vld [vmem:[%s5931_s1 + $0x70] sm:$0xf]  ;;  %v3891_v1 = vld [vmem:[%s5931_s1 + $0x74] sm:$0xf0]  ;;  %v3890_v2 = vld [vmem:[%s5931_s1 + $0x74] sm:$0xf] }
   0x2   :  { %v2784_v3 = vor.u32 %v3891_v1, %v2783_v0  ;;  %v2785_v4 = vld [vmem:[%s5931_s1 + $0x78] sm:$0xf0]  ;;  %v2775_v5 = vld [vmem:[%s5931_s1 + $0x60] sm:$0xf]  ;;  %v3889_v6 = vld [vmem:[%s5931_s1 + $0x64] sm:$0xf0] }
   0x3   :  { %v2788_v7 = vor.u32 %v3890_v2, %v2785_v4  ;;  %v3888_v8 = vld [vmem:[%s5931_s1 + $0x64] sm:$0xf]  ;;  %v2777_v9 = vld [vmem:[%s5931_s1 + $0x68] sm:$0xf0]  ;;  %v2776_v10 = vor.u32 %v3889_v6, %v2775_v5  ;;  %v2767_v12 = vld [vmem:[%s5931_s1 + $0x50] sm:$0xf] }
   0x4   :  { %247 = vmatpush.bf16.msra.mxu0 %v2784_v3  ;;  %v2780_v11 = vor.u32 %v3888_v8, %v2777_v9  ;;  %v3887_v13 = vld [vmem:[%s5931_s1 + $0x54] sm:$0xf0]  ;;  %v3886_v14 = vld [vmem:[%s5931_s1 + $0x54] sm:$0xf]  ;;  %v2769_v15 = vld [vmem:[%s5931_s1 + $0x58] sm:$0xf0] }
   0x5   :  { %326 = vmatpush.bf16.msra.mxu1 %v2788_v7  ;;  %v2768_v16 = vor.u32 %v3887_v13, %v2767_v12  ;;  %v2772_v17 = vor.u32 %v3886_v14, %v2769_v15  ;;  %v2759_v18 = vld [vmem:[%s5931_s1 + $0x40] sm:$0xf]  ;;  %v3885_v19 = vld [vmem:[%s5931_s1 + $0x44] sm:$0xf0]  ;;  %v3884_v20 = vld [vmem:[%s5931_s1 + $0x44] sm:$0xf] }
   0x6   :  { %v2761_v21 = vld [vmem:[%s5931_s1 + $0x48] sm:$0xf0]  ;;  %v2760_v22 = vor.u32 %v3885_v19, %v2759_v18  ;;  %v2751_v24 = vld [vmem:[%s5931_s1 + $0x30] sm:$0xf]  ;;  %v3883_v25 = vld [vmem:[%s5931_s1 + $0x34] sm:$0xf0] }
   0x7   :  { %v2764_v23 = vor.u32 %v3884_v20, %v2761_v21  ;;  %v3882_v26 = vld [vmem:[%s5931_s1 + $0x34] sm:$0xf]  ;;  %v2753_v27 = vld [vmem:[%s5931_s1 + $0x38] sm:$0xf0]  ;;  %v2752_v28 = vor.u32 %v3883_v25, %v2751_v24  ;;  %v2743_v30 = vld [vmem:[%s5931_s1 + $0x20] sm:$0xf] }
   0x8   :  { %248 = vmatpush.bf16.msra.mxu0 %v2776_v10  ;;  %v2756_v29 = vor.u32 %v3882_v26, %v2753_v27  ;;  %v3881_v31 = vld [vmem:[%s5931_s1 + $0x24] sm:$0xf0]  ;;  %v3880_v32 = vld [vmem:[%s5931_s1 + $0x24] sm:$0xf]  ;;  %v2745_v33 = vld [vmem:[%s5931_s1 + $0x28] sm:$0xf0] }
   0x9   :  { %327 = vmatpush.bf16.msra.mxu1 %v2780_v11  ;;  %v2744_v34 = vor.u32 %v3881_v31, %v2743_v30  ;;  %v2748_v35 = vor.u32 %v3880_v32, %v2745_v33  ;;  %v2735_v36 = vld [vmem:[%s5931_s1 + $0x10] sm:$0xf]  ;;  %v3879_v37 = vld [vmem:[%s5931_s1 + $0x14] sm:$0xf0]  ;;  %v3878_v38 = vld [vmem:[%s5931_s1 + $0x14] sm:$0xf] }
   0xa   :  { %v2737_v39 = vld [vmem:[%s5931_s1 + $0x18] sm:$0xf0]  ;;  %v2736_v40 = vor.u32 %v3879_v37, %v2735_v36  ;;  %v2727_v42 = vld [vmem:[%s5931_s1] sm:$0xf]  ;;  %v3877_v43 = vld [vmem:[%s5931_s1 + $0x4] sm:$0xf0] }
   0xb   :  { %v2740_v41 = vor.u32 %v3878_v38, %v2737_v39  ;;  %v3876_v44 = vld [vmem:[%s5931_s1 + $0x4] sm:$0xf]  ;;  %v2729_v45 = vld [vmem:[%s5931_s1 + $0x8] sm:$0xf0]  ;;  %v2728_v46 = vor.u32 %v3877_v43, %v2727_v42  ;;  %v3864_v50 = vld [vmem:[%s5932_s0 + $0x10] sm:$0xff] }
   0xc   :  { %249 = vmatpush.bf16.msra.mxu0 %v2768_v16  ;;  %v2732_v47 = vor.u32 %v3876_v44, %v2729_v45  ;;  %v3862_v48 = vld [vmem:[%s5932_s0] sm:$0xff]  ;;  %v3863_v49 = vld [vmem:[%s5932_s0 + $0x8] sm:$0xff]  ;;  %v3865_v51 = vld [vmem:[%s5932_s0 + $0x18] sm:$0xff] }
   0xd   :  { %328 = vmatpush.bf16.msra.mxu1 %v2772_v17  ;;  %v3866_v52 = vld [vmem:[%s5932_s0 + $0x20] sm:$0xff]  ;;  %v3867_v53 = vld [vmem:[%s5932_s0 + $0x28] sm:$0xff]  ;;  %v3868_v54 = vld [vmem:[%s5932_s0 + $0x30] sm:$0xff] }
   0xe   :  { %v3869_v55 = vld [vmem:[%s5932_s0 + $0x38] sm:$0xff]  ;;  %v3870_v56 = vld [vmem:[%s5932_s0 + $0x40] sm:$0xff]  ;;  %v3871_v63 = vld [vmem:[%s5932_s0 + $0x48] sm:$0xff] }
   0xf   :  { %v3872_v6 = vld [vmem:[%s5932_s0 + $0x50] sm:$0xff]  ;;  %v3873_v12 = vld [vmem:[%s5932_s0 + $0x58] sm:$0xff]  ;;  %v3874_v18 = vld [vmem:[%s5932_s0 + $0x60] sm:$0xff] }
  0x10   :  { %250 = vmatpush.bf16.msra.mxu0 %v2760_v22  ;;  %v2863_v24 = vld [vmem:[%s5934_s3 + $0xf0] sm:$0xf]  ;;  %v3923_v25 = vld [vmem:[%s5934_s3 + $0xf4] sm:$0xf0]  ;;  %v3922_v26 = vld [vmem:[%s5934_s3 + $0xf4] sm:$0xf] }
  0x11   :  { %329 = vmatpush.bf16.msra.mxu1 %v2764_v23  ;;  %v3875_v27 = vld [vmem:[%s5932_s0 + $0x68] sm:$0xff]  ;;  %v3920_v36 = vld [vmem:[%s5934_s3 + $0xe4] sm:$0xf]  ;;  %v3918_v42 = vld [vmem:[%s5934_s3 + $0xd4] sm:$0xf] }
  0x12   :  { %v2857_v38 = vld [vmem:[%s5934_s3 + $0xe8] sm:$0xf0]  ;;  %v2849_v44 = vld [vmem:[%s5934_s3 + $0xd8] sm:$0xf0] }
  0x13   :  { %v2860_v39 = vor.u32 %v3920_v36, %v2857_v38  ;;  %v3911_v36 = vld [vmem:[%s5934_s3 + $0x94] sm:$0xf0] }
  0x14   :  { %251 = vmatpush.bf16.msra.mxu0 %v2752_v28  ;;  %v2864_v28 = vor.u32 %v3923_v25, %v2863_v24 }
  0x15   :  { %330 = vmatpush.bf16.msra.mxu1 %v2756_v29  ;;  %v2865_v29 = vld [vmem:[%s5934_s3 + $0xf8] sm:$0xf0] }
  0x16   :  { %v2868_v31 = vor.u32 %v3922_v26, %v2865_v29  ;;  %642 = vmatpush.bf16.msra.mxu2 %v2864_v28  ;;  %v2823_v26 = vld [vmem:[%s5934_s3 + $0xa0] sm:$0xf]  ;;  %v3912_v28 = vld [vmem:[%s5934_s3 + $0xa4] sm:$0xf] }
  0x18   :  { %252 = vmatpush.bf16.msra.mxu0 %v2744_v34  ;;  %681 = vmatpush.bf16.msra.mxu3 %v2868_v31  ;;  %v2855_v34 = vld [vmem:[%s5934_s3 + $0xe0] sm:$0xf]  ;;  %v2825_v31 = vld [vmem:[%s5934_s3 + $0xa8] sm:$0xf0] }
  0x19   :  { %331 = vmatpush.bf16.msra.mxu1 %v2748_v35  ;;  %v3921_v35 = vld [vmem:[%s5934_s3 + $0xe4] sm:$0xf0] }
  0x1a   :  { %v2856_v37 = vor.u32 %v3921_v35, %v2855_v34  ;;  %v2828_v34 = vor.u32 %v3912_v28, %v2825_v31  ;;  %v2815_v35 = vld [vmem:[%s5934_s3 + $0x90] sm:$0xf] }
  0x1b   :  { %v2816_v38 = vor.u32 %v3911_v36, %v2815_v35 }
  0x1c   :  { %253 = vmatpush.bf16.msra.mxu0 %v2736_v40  ;;  %643 = vmatpush.bf16.msra.mxu2 %v2856_v37  ;;  %v2847_v40 = vld [vmem:[%s5934_s3 + $0xd0] sm:$0xf]  ;;  %v3910_v37 = vld [vmem:[%s5934_s3 + $0x94] sm:$0xf] }
  0x1d   :  { %332 = vmatpush.bf16.msra.mxu1 %v2740_v41  ;;  %682 = vmatpush.bf16.msra.mxu3 %v2860_v39  ;;  %v3919_v41 = vld [vmem:[%s5934_s3 + $0xd4] sm:$0xf0]  ;;  %v2817_v39 = vld [vmem:[%s5934_s3 + $0x98] sm:$0xf0] }
  0x1e   :  { %v2848_v43 = vor.u32 %v3919_v41, %v2847_v40  ;;  %v2820_v41 = vor.u32 %v3910_v37, %v2817_v39 }
  0x20   :  { %254 = vmatpush.bf16.msra.mxu0 %v2728_v46  ;;  %v2852_v46 = vor.u32 %v3918_v42, %v2849_v44  ;;  %644 = vmatpush.bf16.msra.mxu2 %v2848_v43  ;;  %v2807_v43 = vld [vmem:[%s5934_s3 + $0x80] sm:$0xf]  ;;  %v3909_v44 = vld [vmem:[%s5934_s3 + $0x84] sm:$0xf0] }
  0x21   :  { %333 = vmatpush.bf16.msra.mxu1 %v2732_v47 }
  0x22   :  { %683 = vmatpush.bf16.msra.mxu3 %v2852_v46  ;;  %v3908_v46 = vld [vmem:[%s5934_s3 + $0x84] sm:$0xf] }
  0x23   :  { %255 = vmatmul.bf16.vlgmr.msra.gmra.mxu0 %v3862_v48 }
  0x24   :  { %334 = vmatmul.bf16.vlgmr.msra.gmra.mxu1 %v3862_v48  ;;  %v2839_v48 = vld [vmem:[%s5934_s3 + $0xc0] sm:$0xf] }
  0x33   :  { %260 = vmatmul.bf16.gmra.mxu0 %v3863_v49 }
  0x34   :  { %339 = vmatmul.bf16.gmra.mxu1 %v3863_v49  ;;  %v3917_v49 = vld [vmem:[%s5934_s3 + $0xc4] sm:$0xf0] }
  0x43   :  { %265 = vmatmul.bf16.gmra.mxu0 %v3864_v50 }
  0x44   :  { %344 = vmatmul.bf16.gmra.mxu1 %v3864_v50  ;;  %v3916_v50 = vld [vmem:[%s5934_s3 + $0xc4] sm:$0xf] }
  0x53   :  { %270 = vmatmul.bf16.gmra.mxu0 %v3865_v51 }
  0x54   :  { %349 = vmatmul.bf16.gmra.mxu1 %v3865_v51  ;;  %v2840_v51 = vor.u32 %v3917_v49, %v2839_v48  ;;  %v2808_v48 = vor.u32 %v3909_v44, %v2807_v43  ;;  %v2809_v49 = vld [vmem:[%s5934_s3 + $0x88] sm:$0xf0] }
  0x56   :  { %645 = vmatpush.bf16.msra.mxu2 %v2840_v51 }
  0x63   :  { %275 = vmatmul.bf16.gmra.mxu0 %v3866_v52 }
  0x64   :  { %354 = vmatmul.bf16.gmra.mxu1 %v3866_v52  ;;  %v2841_v52 = vld [vmem:[%s5934_s3 + $0xc8] sm:$0xf0] }
  0x73   :  { %280 = vmatmul.bf16.gmra.mxu0 %v3867_v53 }
  0x74   :  { %359 = vmatmul.bf16.gmra.mxu1 %v3867_v53  ;;  %v2844_v53 = vor.u32 %v3916_v50, %v2841_v52  ;;  %v2812_v50 = vor.u32 %v3908_v46, %v2809_v49 }
  0x76   :  { %684 = vmatpush.bf16.msra.mxu3 %v2844_v53 }
  0x83   :  { %285 = vmatmul.bf16.gmra.mxu0 %v3868_v54 }
  0x84   :  { %364 = vmatmul.bf16.gmra.mxu1 %v3868_v54  ;;  %v2831_v54 = vld [vmem:[%s5934_s3 + $0xb0] sm:$0xf] }
  0x93   :  { %290 = vmatmul.bf16.gmra.mxu0 %v3869_v55 }
  0x94   :  { %369 = vmatmul.bf16.gmra.mxu1 %v3869_v55  ;;  %v3915_v55 = vld [vmem:[%s5934_s3 + $0xb4] sm:$0xf0] }
  0xa0   :  { %v4303_v57 = vpop.f32.mrf.mxu0 }
  0xa1   :  { %v4305_v58 = vpop.f32.mrf.mxu1 }
  0xa2   :  { %v405_v59 = vmax.f32 %v4303_v57, %v4305_v58 }
  0xa3   :  { %295 = vmatmul.bf16.gmra.mxu0 %v3870_v56 }
  0xa4   :  { %374 = vmatmul.bf16.gmra.mxu1 %v3870_v56  ;;  %v3914_v56 = vld [vmem:[%s5934_s3 + $0xb4] sm:$0xf] }
  0xa8   :  { %v4309_v60 = vpop.f32.mrf.mxu0 }
  0xa9   :  { %v4311_v61 = vpop.f32.mrf.mxu1 }
  0xaa   :  { %v406_v62 = vmax.f32 %v4309_v60, %v4311_v61 }
  0xb0   :  { %v4318_v0 = vpop.f32.mrf.mxu0 }
  0xb1   :  { %v4320_v1 = vpop.f32.mrf.mxu1 }
  0xb2   :  { %v407_v2 = vmax.f32 %v4318_v0, %v4320_v1 }
  0xb3   :  { %300 = vmatmul.bf16.gmra.mxu0 %v3871_v63 }
  0xb4   :  { %379 = vmatmul.bf16.gmra.mxu1 %v3871_v63  ;;  %v2832_v63 = vor.u32 %v3915_v55, %v2831_v54  ;;  %v4494_v55 = vld [vmem:[%s5933_s2] ss:$0 sm:$0xff] }
  0xb6   :  { %646 = vmatpush.bf16.msra.mxu2 %v2832_v63 }
  0xb8   :  { %v4324_v3 = vpop.f32.mrf.mxu0 }
  0xb9   :  { %v4326_v4 = vpop.f32.mrf.mxu1 }
  0xba   :  { %v408_v5 = vmax.f32 %v4324_v3, %v4326_v4  ;;  %v2927_v4 = vld [vmem:[%s5934_s3 + $0x70] sm:$0xf] }
  0xc0   :  { %v4333_v7 = vpop.f32.mrf.mxu0 }
  0xc1   :  { %v4335_v8 = vpop.f32.mrf.mxu1 }
  0xc2   :  { %v409_v9 = vmax.f32 %v4333_v7, %v4335_v8  ;;  %v2929_v7 = vld [vmem:[%s5934_s3 + $0x78] sm:$0xf0] }
  0xc3   :  { %305 = vmatmul.bf16.gmra.mxu0 %v3872_v6 }
  0xc4   :  { %384 = vmatmul.bf16.gmra.mxu1 %v3872_v6  ;;  %v2833_v6 = vld [vmem:[%s5934_s3 + $0xb8] sm:$0xf0] }
  0xc8   :  { %v4339_v10 = vpop.f32.mrf.mxu0 }
  0xc9   :  { %v4341_v11 = vpop.f32.mrf.mxu1 }
  0xd0   :  { %v4346_v13 = vpop.f32.mrf.mxu0 }
  0xd1   :  { %v4348_v14 = vpop.f32.mrf.mxu1 }
  0xd2   :  { %v411_v15 = vmax.f32 %v4346_v13, %v4348_v14  ;;  %v2921_v13 = vld [vmem:[%s5934_s3 + $0x68] sm:$0xf0] }
  0xd3   :  { %310 = vmatmul.bf16.gmra.mxu0 %v3873_v12 }
  0xd4   :  { %389 = vmatmul.bf16.gmra.mxu1 %v3873_v12 }
  0xd8   :  { %v4352_v16 = vpop.f32.mrf.mxu0 }
  0xd9   :  { %v4354_v17 = vpop.f32.mrf.mxu1 }
  0xe0   :  { %v4359_v19 = vpop.f32.mrf.mxu0 }
  0xe1   :  { %v4361_v20 = vpop.f32.mrf.mxu1 }
  0xe2   :  { %v413_v21 = vmax.f32 %v4359_v19, %v4361_v20  ;;  %v3901_v19 = vld [vmem:[%s5934_s3 + $0x44] sm:$0xf0]  ;;  %v3900_v20 = vld [vmem:[%s5934_s3 + $0x44] sm:$0xf] }
  0xe3   :  { %315 = vmatmul.bf16.gmra.mxu0 %v3874_v18 }
  0xe4   :  { %394 = vmatmul.bf16.gmra.mxu1 %v3874_v18  ;;  %v2836_v18 = vor.u32 %v3914_v56, %v2833_v6 }
  0xe6   :  { %685 = vmatpush.bf16.msra.mxu3 %v2836_v18 }
  0xe8   :  { %v4365_v22 = vpop.f32.mrf.mxu0 }
  0xe9   :  { %v4367_v23 = vpop.f32.mrf.mxu1 }
  0xea   :  { %686 = vmatpush.bf16.msra.mxu3 %v2828_v34 }
  0xee   :  { %687 = vmatpush.bf16.msra.mxu3 %v2820_v41 }
  0xf0   :  { %v4384_v30 = vpop.f32.mrf.mxu0 }
  0xf1   :  { %v4386_v32 = vpop.f32.mrf.mxu1 }
  0xf2   :  { %v415_v33 = vmax.f32 %v4384_v30, %v4386_v32  ;;  %688 = vmatpush.bf16.msra.mxu3 %v2812_v50  ;;  %v2871_v30 = vld [vmem:[%s5934_s3] sm:$0xf]  ;;  %v3893_v32 = vld [vmem:[%s5934_s3 + $0x4] sm:$0xf0] }
  0xf3   :  { %320 = vmatmul.bf16.gmra.mxu0 %v3875_v27 }
  0xf4   :  { %399 = vmatmul.bf16.gmra.mxu1 %v3875_v27  ;;  %v3913_v27 = vld [vmem:[%s5934_s3 + $0xa4] sm:$0xf0] }
  0xf5   :  { %v2824_v29 = vor.u32 %v3913_v27, %v2823_v26 }
  0xf7   :  { %647 = vmatpush.bf16.msra.mxu2 %v2824_v29 }
  0xf8   :  { %v4414_v45 = vpop.f32.mrf.mxu0 }
  0xf9   :  { %v4416_v47 = vpop.f32.mrf.mxu1 }
  0xfb   :  { %648 = vmatpush.bf16.msra.mxu2 %v2816_v38 }
  0xff   :  { %649 = vmatpush.bf16.msra.mxu2 %v2808_v48 }
 0x100   :  { %v4442_v12 = vpop.f32.mrf.mxu0 }
 0x101   :  { %v4444_v24 = vpop.f32.mrf.mxu1 }
 0x102   :  { %v417_v25 = vmax.f32 %v4442_v12, %v4444_v24  ;;  %v3007_v12 = vld [vmem:[%s5934_s3 + $0x170] sm:$0xf]  ;;  %v3939_v24 = vld [vmem:[%s5934_s3 + $0x174] sm:$0xf0] }
 0x108   :  { %v4472_v40 = vpop.f32.mrf.mxu0 }
 0x109   :  { %v4474_v42 = vpop.f32.mrf.mxu1 }
 0x110   :  { %v291_v51 = vpop.f32.mrf.mxu0 }
 0x111   :  { %v370_v52 = vpop.f32.mrf.mxu1 }
 0x112   :  { %v419_v53 = vmax.f32 %v291_v51, %v370_v52 }
 0x114   :  { %v433_v54 = vmax.f32 %v405_v59, %v419_v53 }
 0x116   :  { %v451_v56 = vadd.f32 %v4494_v55, %v433_v54 }
 0x118   :  { %v293_v63 = vpop.f32.mrf.mxu0  ;;  %v465_v26 = vmax.f32 %v451_v56, 0.0  ;;  %v3906_v56 = vld [vmem:[%s5934_s3 + $0x74] sm:$0xf] }
 0x119   :  { %v372_v6 = vpop.f32.mrf.mxu1 }
 0x11a   :  { %v420_v18 = vmax.f32 %v293_v63, %v372_v6  ;;  %v479_v29 = vpack.c.bf16 %v465_v26, %v465_v26  ;;  %v2932_v6 = vor.u32 %v3906_v56, %v2929_v7  ;;  %v410_v26 = vmax.f32 %v4339_v10, %v4341_v11 }
 0x11c   :  { %v434_v27 = vmax.f32 %v406_v62, %v420_v18  ;;  %v721_v37 = vunpack.c.l.b16 %v479_v29  ;;  %853 = vmatpush.bf16.msrb.mxu3 %v2932_v6 }
 0x11e   :  { %v452_v28 = vadd.f32 %v4494_v55, %v434_v27 }
 0x120   :  { %v296_v57 = vpop.f32.mrf.mxu0  ;;  %v466_v58 = vmax.f32 %v452_v28, 0.0 }
 0x121   :  { %v375_v59 = vpop.f32.mrf.mxu1 }
 0x122   :  { %v421_v31 = vmax.f32 %v296_v57, %v375_v59  ;;  %v480_v34 = vpack.c.bf16 %v466_v58, %v466_v58 }
 0x124   :  { %v435_v35 = vmax.f32 %v407_v2, %v421_v31  ;;  %v538_v36 = vunpack.c.l.b16 %v480_v34 }
 0x126   :  { %v453_v38 = vadd.f32 %v4494_v55, %v435_v35  ;;  %v4505_v39 = vpack.c.b16 %v538_v36, %v721_v37 }
 0x128   :  { %v298_v60 = vpop.f32.mrf.mxu0  ;;  %v467_v61 = vmax.f32 %v453_v38, 0.0 }
 0x129   :  { %v377_v62 = vpop.f32.mrf.mxu1 }
 0x12a   :  { %v422_v41 = vmax.f32 %v298_v60, %v377_v62  ;;  %v481_v43 = vpack.c.bf16 %v467_v61, %v467_v61  ;;  %v2919_v61 = vld [vmem:[%s5934_s3 + $0x60] sm:$0xf]  ;;  %v3905_v62 = vld [vmem:[%s5934_s3 + $0x64] sm:$0xf0] }
 0x12c   :  { %v436_v44 = vmax.f32 %v408_v5, %v422_v41  ;;  %v539_v46 = vunpack.c.l.b16 %v481_v43  ;;  %v3907_v5 = vld [vmem:[%s5934_s3 + $0x74] sm:$0xf0]  ;;  %v3904_v41 = vld [vmem:[%s5934_s3 + $0x64] sm:$0xf]  ;;  %v2920_v43 = vor.u32 %v3905_v62, %v2919_v61  ;;  %v2897_v62 = vld [vmem:[%s5934_s3 + $0x38] sm:$0xf0] }
 0x12d   :  { %v2928_v63 = vor.u32 %v3907_v5, %v2927_v4 }
 0x12e   :  { %v550_v48 = vpack.c.b16 %v539_v46, %v538_v36  ;;  %v454_v0 = vadd.f32 %v4494_v55, %v436_v44  ;;  %v2924_v44 = vor.u32 %v3904_v41, %v2921_v13 }
 0x12f   :  { %814 = vmatpush.bf16.msrb.mxu2 %v2928_v63 }
 0x130   :  { %650 = vmatmul.bf16.vlgmr.msra.gmra.mxu2 %v550_v48  ;;  %689 = vmatmul.bf16.vlgmr.msra.gmra.mxu3 %v550_v48  ;;  %v301_v1 = vpop.f32.mrf.mxu0  ;;  %v468_v2 = vmax.f32 %v454_v0, 0.0  ;;  %v412_v48 = vmax.f32 %v4352_v16, %v4354_v17  ;;  %v3902_v16 = vld [vmem:[%s5934_s3 + $0x54] sm:$0xf] }
 0x131   :  { %v380_v49 = vpop.f32.mrf.mxu1  ;;  %854 = vmatpush.bf16.msrb.mxu3 %v2924_v44 }
 0x132   :  { %v423_v50 = vmax.f32 %v301_v1, %v380_v49  ;;  %v482_v51 = vpack.c.bf16 %v468_v2, %v468_v2 }
 0x133   :  { %815 = vmatpush.bf16.msrb.mxu2 %v2920_v43 }
 0x134   :  { %v437_v52 = vmax.f32 %v409_v9, %v423_v50  ;;  %v540_v53 = vunpack.c.l.b16 %v482_v51 }
 0x136   :  { %v455_v54 = vadd.f32 %v4494_v55, %v437_v52  ;;  %v4515_v3 = vpack.c.b16 %v540_v53, %v539_v46  ;;  %v2911_v52 = vld [vmem:[%s5934_s3 + $0x50] sm:$0xf] }
 0x138   :  { %v303_v8 = vpop.f32.mrf.mxu0  ;;  %v469_v9 = vmax.f32 %v455_v54, 0.0  ;;  %v2913_v54 = vld [vmem:[%s5934_s3 + $0x58] sm:$0xf0] }
 0x139   :  { %v382_v18 = vpop.f32.mrf.mxu1  ;;  %v2916_v56 = vor.u32 %v3902_v16, %v2913_v54  ;;  %v3894_v16 = vld [vmem:[%s5934_s3 + $0x14] sm:$0xf] }
 0x13a   :  { %v424_v27 = vmax.f32 %v303_v8, %v382_v18  ;;  %v483_v28 = vpack.c.bf16 %v469_v9, %v469_v9 }
 0x13b   :  { %855 = vmatpush.bf16.msrb.mxu3 %v2916_v56 }
 0x13c   :  { %v438_v29 = vmax.f32 %v410_v26, %v424_v27  ;;  %v541_v57 = vunpack.c.l.b16 %v483_v28 }
 0x13e   :  { %v456_v58 = vadd.f32 %v4494_v55, %v438_v29  ;;  %v551_v59 = vpack.c.b16 %v541_v57, %v540_v53  ;;  %v3903_v53 = vld [vmem:[%s5934_s3 + $0x54] sm:$0xf0] }
 0x13f   :  { %v2912_v17 = vor.u32 %v3903_v53, %v2911_v52 }
 0x140   :  { %655 = vmatmul.bf16.gmra.mxu2 %v551_v59  ;;  %694 = vmatmul.bf16.gmra.mxu3 %v551_v59  ;;  %v306_v31 = vpop.f32.mrf.mxu0  ;;  %v470_v34 = vmax.f32 %v456_v58, 0.0 }
 0x141   :  { %v385_v35 = vpop.f32.mrf.mxu1  ;;  %816 = vmatpush.bf16.msrb.mxu2 %v2912_v17  ;;  %v2881_v17 = vld [vmem:[%s5934_s3 + $0x18] sm:$0xf0] }
 0x142   :  { %v425_v36 = vmax.f32 %v306_v31, %v385_v35  ;;  %v484_v37 = vpack.c.bf16 %v470_v34, %v470_v34  ;;  %v2903_v31 = vld [vmem:[%s5934_s3 + $0x40] sm:$0xf]  ;;  %v2905_v34 = vld [vmem:[%s5934_s3 + $0x48] sm:$0xf0]  ;;  %v2884_v56 = vor.u32 %v3894_v16, %v2881_v17 }
 0x143   :  { %v2908_v35 = vor.u32 %v3900_v20, %v2905_v34  ;;  %v2985_v17 = vld [vmem:[%s5934_s3 + $0x148] sm:$0xf0] }
 0x144   :  { %v439_v38 = vmax.f32 %v411_v15, %v425_v36  ;;  %v542_v10 = vunpack.c.l.b16 %v484_v37 }
 0x145   :  { %856 = vmatpush.bf16.msrb.mxu3 %v2908_v35 }
 0x146   :  { %v457_v11 = vadd.f32 %v4494_v55, %v439_v38  ;;  %v4536_v60 = vpack.c.b16 %v542_v10, %v541_v57  ;;  %v414_v57 = vmax.f32 %v4365_v22, %v4367_v23  ;;  %v2895_v38 = vld [vmem:[%s5934_s3 + $0x30] sm:$0xf] }
 0x148   :  { %v308_v14 = vpop.f32.mrf.mxu0  ;;  %v471_v15 = vmax.f32 %v457_v11, 0.0  ;;  %v3898_v11 = vld [vmem:[%s5934_s3 + $0x34] sm:$0xf] }
 0x149   :  { %v387_v46 = vpop.f32.mrf.mxu1  ;;  %v2900_v13 = vor.u32 %v3898_v11, %v2897_v62  ;;  %v3008_v11 = vor.u32 %v3939_v24, %v3007_v12  ;;  %v2951_v12 = vld [vmem:[%s5934_s3 + $0x100] sm:$0xf]  ;;  %v3925_v24 = vld [vmem:[%s5934_s3 + $0x104] sm:$0xf0] }
 0x14a   :  { %v426_v0 = vmax.f32 %v308_v14, %v387_v46  ;;  %v485_v1 = vpack.c.bf16 %v471_v15, %v471_v15  ;;  %v2887_v46 = vld [vmem:[%s5934_s3 + $0x20] sm:$0xf] }
 0x14b   :  { %857 = vmatpush.bf16.msrb.mxu3 %v2900_v13 }
 0x14c   :  { %v440_v2 = vmax.f32 %v412_v48, %v426_v0  ;;  %v543_v49 = vunpack.c.l.b16 %v485_v1  ;;  %v3897_v48 = vld [vmem:[%s5934_s3 + $0x24] sm:$0xf0]  ;;  %v3896_v0 = vld [vmem:[%s5934_s3 + $0x24] sm:$0xf] }
 0x14d   :  { %v2888_v1 = vor.u32 %v3897_v48, %v2887_v46  ;;  %v3935_v46 = vld [vmem:[%s5934_s3 + $0x154] sm:$0xf0]  ;;  %v3934_v48 = vld [vmem:[%s5934_s3 + $0x154] sm:$0xf] }
 0x14e   :  { %v458_v50 = vadd.f32 %v4494_v55, %v440_v2  ;;  %v552_v51 = vpack.c.b16 %v543_v49, %v542_v10  ;;  %v3899_v10 = vld [vmem:[%s5934_s3 + $0x34] sm:$0xf0]  ;;  %v2889_v2 = vld [vmem:[%s5934_s3 + $0x28] sm:$0xf0] }
 0x14f   :  { %v2896_v61 = vor.u32 %v3899_v10, %v2895_v38  ;;  %v2892_v53 = vor.u32 %v3896_v0, %v2889_v2 }
 0x150   :  { %660 = vmatmul.bf16.gmra.mxu2 %v552_v51  ;;  %699 = vmatmul.bf16.gmra.mxu3 %v552_v51  ;;  %v311_v4 = vpop.f32.mrf.mxu0  ;;  %v472_v5 = vmax.f32 %v458_v50, 0.0  ;;  %v3895_v50 = vld [vmem:[%s5934_s3 + $0x14] sm:$0xf0] }
 0x151   :  { %v390_v63 = vpop.f32.mrf.mxu1  ;;  %858 = vmatpush.bf16.msrb.mxu3 %v2892_v53  ;;  %v3932_v53 = vld [vmem:[%s5934_s3 + $0x144] sm:$0xf] }
 0x152   :  { %v427_v7 = vmax.f32 %v311_v4, %v390_v63  ;;  %v486_v8 = vpack.c.bf16 %v472_v5, %v472_v5  ;;  %v2873_v63 = vld [vmem:[%s5934_s3 + $0x8] sm:$0xf0] }
 0x154   :  { %v441_v9 = vmax.f32 %v413_v21, %v427_v7  ;;  %v544_v6 = vunpack.c.l.b16 %v486_v8  ;;  %v2904_v21 = vor.u32 %v3901_v19, %v2903_v31 }
 0x155   :  { %859 = vmatpush.bf16.msrb.mxu3 %v2884_v56 }
 0x156   :  { %v459_v18 = vadd.f32 %v4494_v55, %v441_v9  ;;  %v4569_v26 = vpack.c.b16 %v544_v6, %v543_v49  ;;  %817 = vmatpush.bf16.msrb.mxu2 %v2904_v21  ;;  %v2879_v49 = vld [vmem:[%s5934_s3 + $0x10] sm:$0xf] }
 0x157   :  { %v2880_v54 = vor.u32 %v3895_v50, %v2879_v49 }
 0x158   :  { %v313_v27 = vpop.f32.mrf.mxu0  ;;  %v473_v28 = vmax.f32 %v459_v18, 0.0  ;;  %v416_v18 = vmax.f32 %v4414_v45, %v4416_v47 }
 0x159   :  { %v392_v29 = vpop.f32.mrf.mxu1 }
 0x15a   :  { %v428_v58 = vmax.f32 %v313_v27, %v392_v29  ;;  %v487_v59 = vpack.c.bf16 %v473_v28, %v473_v28  ;;  %818 = vmatpush.bf16.msrb.mxu2 %v2896_v61  ;;  %v3009_v61 = vld [vmem:[%s5934_s3 + $0x178] sm:$0xf0] }
 0x15c   :  { %v442_v22 = vmax.f32 %v414_v57, %v428_v58  ;;  %v545_v23 = vunpack.c.l.b16 %v487_v59 }
 0x15e   :  { %v460_v36 = vadd.f32 %v4494_v55, %v442_v22  ;;  %v553_v37 = vpack.c.b16 %v545_v23, %v544_v6  ;;  %819 = vmatpush.bf16.msrb.mxu2 %v2888_v1  ;;  %v2872_v6 = vor.u32 %v3893_v32, %v2871_v30  ;;  %v2993_v1 = vld [vmem:[%s5934_s3 + $0x158] sm:$0xf0]  ;;  %v3131_v30 = vld [vmem:[%s5935_s5 + $0x168] sm:$0xf]  ;;  %v3986_v32 = vld [vmem:[%s5935_s5 + $0x170] sm:$0xf0] }
 0x15f   :  { %v2996_v2 = vor.u32 %v3934_v48, %v2993_v1  ;;  %v3121_v1 = vld [vmem:[%s5935_s5 + $0x15c] sm:$0xf0] }
 0x160   :  { %665 = vmatmul.bf16.gmra.mxu2 %v553_v37  ;;  %704 = vmatmul.bf16.gmra.mxu3 %v553_v37  ;;  %v316_v41 = vpop.f32.mrf.mxu0  ;;  %v474_v43 = vmax.f32 %v460_v36, 0.0 }
 0x161   :  { %v395_v14 = vpop.f32.mrf.mxu1 }
 0x162   :  { %v429_v15 = vmax.f32 %v316_v41, %v395_v14  ;;  %v488_v44 = vpack.c.bf16 %v474_v43, %v474_v43  ;;  %820 = vmatpush.bf16.msrb.mxu2 %v2880_v54  ;;  %v3937_v41 = vld [vmem:[%s5934_s3 + $0x164] sm:$0xf0]  ;;  %v3936_v43 = vld [vmem:[%s5934_s3 + $0x164] sm:$0xf]  ;;  %v3001_v14 = vld [vmem:[%s5934_s3 + $0x168] sm:$0xf0]  ;;  %v2988_v54 = vor.u32 %v3932_v53, %v2985_v17 }
 0x164   :  { %v443_v51 = vmax.f32 %v415_v33, %v429_v15  ;;  %v546_v52 = vunpack.c.l.b16 %v488_v44  ;;  %v3892_v33 = vld [vmem:[%s5934_s3 + $0x4] sm:$0xf]  ;;  %v3004_v15 = vor.u32 %v3936_v43, %v3001_v14  ;;  %v2991_v44 = vld [vmem:[%s5934_s3 + $0x150] sm:$0xf] }
 0x165   :  { %v2876_v29 = vor.u32 %v3892_v33, %v2873_v63  ;;  %v2992_v0 = vor.u32 %v3935_v46, %v2991_v44  ;;  %v3132_v33 = vor.u32 %v3986_v32, %v3131_v30  ;;  %v2975_v63 = vld [vmem:[%s5934_s3 + $0x130] sm:$0xf]  ;;  %v3107_v30 = vld [vmem:[%s5935_s5 + $0x138] sm:$0xf]  ;;  %v3980_v32 = vld [vmem:[%s5935_s5 + $0x140] sm:$0xf0] }
 0x166   :  { %v461_v4 = vadd.f32 %v4494_v55, %v443_v51  ;;  %v4626_v5 = vpack.c.b16 %v546_v52, %v545_v23  ;;  %821 = vmatpush.bf16.msrb.mxu2 %v2872_v6  ;;  %v2983_v51 = vld [vmem:[%s5934_s3 + $0x140] sm:$0xf]  ;;  %v2977_v6 = vld [vmem:[%s5934_s3 + $0x138] sm:$0xf0]  ;;  %v3119_v14 = vld [vmem:[%s5935_s5 + $0x150] sm:$0xf] }
 0x167   :  { %860 = vmatpush.bf16.msrb.mxu3 %v2876_v29  ;;  %1304 = vmatpush.bf16.msrb.mxu0 %v3132_v33  ;;  %v3928_v29 = vld [vmem:[%s5934_s3 + $0x124] sm:$0xf]  ;;  %v3108_v33 = vor.u32 %v3980_v32, %v3107_v30 }
 0x168   :  { %v318_v7 = vpop.f32.mrf.mxu0  ;;  %v475_v8 = vmax.f32 %v461_v4, 0.0 }
 0x169   :  { %v397_v9 = vpop.f32.mrf.mxu1 }
 0x16a   :  { %v430_v27 = vmax.f32 %v318_v7, %v397_v9  ;;  %v489_v28 = vpack.c.bf16 %v475_v8, %v475_v8  ;;  %993 = vmatpush.bf16.msra.mxu2 %v3008_v11  ;;  %v3931_v7 = vld [vmem:[%s5934_s3 + $0x134] sm:$0xf0]  ;;  %v3930_v8 = vld [vmem:[%s5934_s3 + $0x134] sm:$0xf] }
 0x16b   :  { %v2976_v9 = vor.u32 %v3931_v7, %v2975_v63 }
 0x16c   :  { %v444_v57 = vmax.f32 %v416_v18, %v430_v27  ;;  %v547_v58 = vunpack.c.l.b16 %v489_v28  ;;  %v2980_v18 = vor.u32 %v3930_v8, %v2977_v6  ;;  %v2967_v27 = vld [vmem:[%s5934_s3 + $0x120] sm:$0xf]  ;;  %v3929_v28 = vld [vmem:[%s5934_s3 + $0x124] sm:$0xf0] }
 0x16d   :  { %v3109_v8 = vld [vmem:[%s5935_s5 + $0x144] sm:$0xf0] }
 0x16e   :  { %v462_v59 = vadd.f32 %v4494_v55, %v444_v57  ;;  %v554_v31 = vpack.c.b16 %v547_v58, %v546_v52  ;;  %v3933_v52 = vld [vmem:[%s5934_s3 + $0x144] sm:$0xf0] }
 0x16f   :  { %v2984_v16 = vor.u32 %v3933_v52, %v2983_v51 }
 0x170   :  { %670 = vmatmul.bf16.gmra.mxu2 %v554_v31  ;;  %709 = vmatmul.bf16.gmra.mxu3 %v554_v31  ;;  %v321_v19 = vpop.f32.mrf.mxu0  ;;  %v476_v20 = vmax.f32 %v462_v59, 0.0  ;;  %v2968_v59 = vor.u32 %v3929_v28, %v2967_v27  ;;  %v2969_v31 = vld [vmem:[%s5934_s3 + $0x128] sm:$0xf0] }
 0x171   :  { %v400_v21 = vpop.f32.mrf.mxu1 }
 0x172   :  { %v431_v34 = vmax.f32 %v321_v19, %v400_v21  ;;  %v490_v22 = vpack.c.bf16 %v476_v20, %v476_v20  ;;  %v3985_v19 = vld [vmem:[%s5935_s5 + $0x16c] sm:$0xf]  ;;  %v3133_v20 = vld [vmem:[%s5935_s5 + $0x174] sm:$0xf0]  ;;  %v2972_v21 = vor.u32 %v3928_v29, %v2969_v31  ;;  %v3095_v29 = vld [vmem:[%s5935_s5 + $0x120] sm:$0xf] }
 0x174   :  { %v445_v45 = vmax.f32 %v417_v25, %v431_v34  ;;  %v548_v47 = vunpack.c.l.b16 %v490_v22  ;;  %v3938_v25 = vld [vmem:[%s5934_s3 + $0x174] sm:$0xf]  ;;  %v3136_v34 = vor.u32 %v3985_v19, %v3133_v20  ;;  %v2959_v22 = vld [vmem:[%s5934_s3 + $0x110] sm:$0xf]  ;;  %v3976_v20 = vld [vmem:[%s5935_s5 + $0x124] sm:$0xf] }
 0x175   :  { %v3012_v62 = vor.u32 %v3938_v25, %v3009_v61  ;;  %v3924_v25 = vld [vmem:[%s5934_s3 + $0x104] sm:$0xf] }
 0x176   :  { %v463_v23 = vadd.f32 %v4494_v55, %v445_v45  ;;  %v4647_v35 = vpack.c.b16 %v548_v47, %v547_v58  ;;  %v3927_v45 = vld [vmem:[%s5934_s3 + $0x114] sm:$0xf0]  ;;  %1317 = vmatpush.bf16.msrb.mxu1 %v3136_v34 }
 0x177   :  { %1032 = vmatpush.bf16.msra.mxu3 %v3012_v62  ;;  %v2952_v62 = vor.u32 %v3925_v24, %v2951_v12  ;;  %v418_v12 = vmax.f32 %v4472_v40, %v4474_v42 }
 0x178   :  { %v477_v36 = vmax.f32 %v463_v23, 0.0  ;;  %v2960_v23 = vor.u32 %v3927_v45, %v2959_v22  ;;  %v323_v45 = vpop.f32.mrf.mxu0 }
 0x17a   :  { %v4649_v37 = vpack.c.bf16 %v477_v36, %v477_v36  ;;  %v2961_v36 = vld [vmem:[%s5934_s3 + $0x118] sm:$0xf0] }
 0x17b   :  { %1033 = vmatpush.bf16.msra.mxu3 %v3004_v15  ;;  %v3983_v15 = vld [vmem:[%s5935_s5 + $0x158] sm:$0xf0] }
 0x17c   :  { %v549_v38 = vunpack.c.l.b16 %v4649_v37  ;;  %v3120_v44 = vor.u32 %v3983_v15, %v3119_v14 }
 0x17e   :  { %v555_v10 = vpack.c.b16 %v549_v38, %v548_v47  ;;  %v3926_v47 = vld [vmem:[%s5934_s3 + $0x114] sm:$0xf]  ;;  %1305 = vmatpush.bf16.msrb.mxu0 %v3120_v44  ;;  %v3973_v44 = vld [vmem:[%s5935_s5 + $0x10c] sm:$0xf] }
 0x17f   :  { %1034 = vmatpush.bf16.msra.mxu3 %v2996_v2 }
 0x180   :  { %675 = vmatmul.bf16.gmra.mxu2 %v555_v10  ;;  %714 = vmatmul.bf16.gmra.mxu3 %v555_v10  ;;  %v2964_v10 = vor.u32 %v3926_v47, %v2961_v36  ;;  %v402_v47 = vpop.f32.mrf.mxu1 }
 0x182   :  { %1306 = vmatpush.bf16.msrb.mxu0 %v3108_v33 }
 0x183   :  { %1035 = vmatpush.bf16.msra.mxu3 %v2988_v54 }
 0x187   :  { %1036 = vmatpush.bf16.msra.mxu3 %v2980_v18 }
 0x18b   :  { %1037 = vmatpush.bf16.msra.mxu3 %v2972_v21 }
 0x18f   :  { %1038 = vmatpush.bf16.msra.mxu3 %v2964_v10  ;;  %v432_v10 = vmax.f32 %v323_v45, %v402_v47  ;;  %v3343_v47 = vld [vmem:[%s5935_s5 + $0x210] sm:$0xf] }
 0x190   :  { %822 = vmatmul.bf16.vlgmr.msrb.gmra.mxu2 %v4505_v39  ;;  %861 = vmatmul.bf16.vlgmr.msrb.gmra.mxu3 %v4505_v39  ;;  %v2999_v39 = vld [vmem:[%s5934_s3 + $0x160] sm:$0xf] }
 0x191   :  { %v3000_v13 = vor.u32 %v3937_v41, %v2999_v39  ;;  %v2953_v39 = vld [vmem:[%s5934_s3 + $0x108] sm:$0xf0]  ;;  %v446_v24 = vmax.f32 %v418_v12, %v432_v10  ;;  %v4007_v10 = vld [vmem:[%s5935_s5 + $0x218] sm:$0xf0] }
 0x192   :  { %v2956_v41 = vor.u32 %v3924_v25, %v2953_v39  ;;  %v3083_v39 = vld [vmem:[%s5935_s5 + $0x108] sm:$0xf]  ;;  %v3344_v12 = vor.u32 %v4007_v10, %v3343_v47  ;;  %v3962_v47 = vld [vmem:[%s5935_s5 + $0xb0] sm:$0xf0]  ;;  %v3319_v10 = vld [vmem:[%s5935_s5 + $0x1e0] sm:$0xf] }
 0x193   :  { %994 = vmatpush.bf16.msra.mxu2 %v3000_v13  ;;  %v464_v14 = vadd.f32 %v4494_v55, %v446_v24 }
 0x194   :  { %1039 = vmatpush.bf16.msra.mxu3 %v2956_v41 }
 0x195   :  { %v478_v40 = vmax.f32 %v464_v14, 0.0  ;;  %v3967_v14 = vld [vmem:[%s5935_s5 + $0xdc] sm:$0xf] }
 0x197   :  { %995 = vmatpush.bf16.msra.mxu2 %v2992_v0  ;;  %v3982_v0 = vld [vmem:[%s5935_s5 + $0x154] sm:$0xf]  ;;  %v492_v55 = vpack.c.bf16 %v478_v40, %v478_v40 }
 0x198   :  { %v3124_v2 = vor.u32 %v3982_v0, %v3121_v1  ;;  %v3085_v0 = vld [vmem:[%s5935_s5 + $0x114] sm:$0xf0] }
 0x199   :  { %v3088_v1 = vor.u32 %v3973_v44, %v3085_v0  ;;  %v3061_v44 = vld [vmem:[%s5935_s5 + $0xe4] sm:$0xf0]  ;;  %v3331_v0 = vld [vmem:[%s5935_s5 + $0x1f8] sm:$0xf] }
 0x19a   :  { %1318 = vmatpush.bf16.msrb.mxu1 %v3124_v2  ;;  %v910_v2 = vunpack.c.l.b16 %v492_v55  ;;  %v3064_v55 = vor.u32 %v3967_v14, %v3061_v44  ;;  %v4009_v14 = vld [vmem:[%s5935_s5 + $0x22c] sm:$0xf] }
 0x19b   :  { %996 = vmatpush.bf16.msra.mxu2 %v2984_v16 }
 0x19c   :  { %v911_v32 = vpack.c.b16 %v910_v2, %v549_v38  ;;  %v3355_v38 = vld [vmem:[%s5935_s5 + $0x228] sm:$0xf] }
 0x19f   :  { %997 = vmatpush.bf16.msra.mxu2 %v2976_v9 }
 0x1a0   :  { %827 = vmatmul.bf16.gmra.mxu2 %v4515_v3  ;;  %866 = vmatmul.bf16.gmra.mxu3 %v4515_v3 }
 0x1a3   :  { %998 = vmatpush.bf16.msra.mxu2 %v2968_v59 }
 0x1a7   :  { %999 = vmatpush.bf16.msra.mxu2 %v2960_v23 }
 0x1ab   :  { %1000 = vmatpush.bf16.msra.mxu2 %v2952_v62 }
 0x1b0   :  { %832 = vmatmul.bf16.gmra.mxu2 %v4536_v60  ;;  %871 = vmatmul.bf16.gmra.mxu3 %v4536_v60 }
 0x1b3   :  { %v4696_v49 = vpop.f32.mrf.mxu2  ;;  %v4698_v50 = vpop.f32.mrf.mxu3 }
 0x1bb   :  { %v4712_v4 = vpop.f32.mrf.mxu2  ;;  %v4714_v56 = vpop.f32.mrf.mxu3 }
 0x1c0   :  { %837 = vmatmul.bf16.gmra.mxu2 %v4569_v26  ;;  %876 = vmatmul.bf16.gmra.mxu3 %v4569_v26 }
 0x1c3   :  { %v4745_v57 = vpop.f32.mrf.mxu2  ;;  %v4747_v58 = vpop.f32.mrf.mxu3 }
 0x1cb   :  { %v4779_v11 = vpop.f32.mrf.mxu2  ;;  %v4781_v61 = vpop.f32.mrf.mxu3 }
 0x1d0   :  { %842 = vmatmul.bf16.gmra.mxu2 %v4626_v5  ;;  %881 = vmatmul.bf16.gmra.mxu3 %v4626_v5 }
 0x1d3   :  { %v4788_v43 = vpop.f32.mrf.mxu2  ;;  %v4790_v13 = vpop.f32.mrf.mxu3 }
 0x1db   :  { %v4798_v46 = vpop.f32.mrf.mxu2  ;;  %v4800_v48 = vpop.f32.mrf.mxu3 }
 0x1e0   :  { %847 = vmatmul.bf16.gmra.mxu2 %v4647_v35  ;;  %886 = vmatmul.bf16.gmra.mxu3 %v4647_v35 }
 0x1e3   :  { %v4810_v51 = vpop.f32.mrf.mxu2  ;;  %v4812_v52 = vpop.f32.mrf.mxu3 }
 0x1eb   :  { %v4814_v53 = vpop.f32.mrf.mxu2  ;;  %v4816_v16 = vpop.f32.mrf.mxu3 }
 0x1f0   :  { %1001 = vmatmul.bf16.vlgmr.msra.gmra.mxu2 %v4515_v3  ;;  %1040 = vmatmul.bf16.vlgmr.msra.gmra.mxu3 %v4515_v3  ;;  %v3979_v3 = vld [vmem:[%s5935_s5 + $0x13c] sm:$0xf] }
 0x1f1   :  { %v3112_v9 = vor.u32 %v3979_v3, %v3109_v8  ;;  %v3071_v8 = vld [vmem:[%s5935_s5 + $0xf0] sm:$0xf] }
 0x1f3   :  { %v4820_v17 = vpop.f32.mrf.mxu2  ;;  %v4822_v54 = vpop.f32.mrf.mxu3  ;;  %1319 = vmatpush.bf16.msrb.mxu1 %v3112_v9  ;;  %v3971_v9 = vld [vmem:[%s5935_s5 + $0xf8] sm:$0xf0] }
 0x1fb   :  { %v4830_v63 = vpop.f32.mrf.mxu2  ;;  %v4832_v7 = vpop.f32.mrf.mxu3 }
 0x200   :  { %1006 = vmatmul.bf16.gmra.mxu2 %v4536_v60  ;;  %1045 = vmatmul.bf16.gmra.mxu3 %v4536_v60  ;;  %v3977_v60 = vld [vmem:[%s5935_s5 + $0x128] sm:$0xf0] }
 0x201   :  { %v3096_v59 = vor.u32 %v3977_v60, %v3095_v29  ;;  %v3072_v29 = vor.u32 %v3971_v9, %v3071_v8  ;;  %v3965_v8 = vld [vmem:[%s5935_s5 + $0xc8] sm:$0xf0]  ;;  %v3964_v9 = vld [vmem:[%s5935_s5 + $0xc4] sm:$0xf] }
 0x203   :  { %v4842_v6 = vpop.f32.mrf.mxu2  ;;  %v4844_v18 = vpop.f32.mrf.mxu3  ;;  %1307 = vmatpush.bf16.msrb.mxu0 %v3096_v59  ;;  %v4010_v59 = vld [vmem:[%s5935_s5 + $0x230] sm:$0xf0] }
 0x20b   :  { %v4846_v27 = vpop.f32.mrf.mxu2  ;;  %v4848_v28 = vpop.f32.mrf.mxu3 }
 0x210   :  { %1011 = vmatmul.bf16.gmra.mxu2 %v4569_v26  ;;  %1050 = vmatmul.bf16.gmra.mxu3 %v4569_v26  ;;  %v3097_v26 = vld [vmem:[%s5935_s5 + $0x12c] sm:$0xf0] }
 0x211   :  { %v3100_v21 = vor.u32 %v3976_v20, %v3097_v26  ;;  %v3970_v20 = vld [vmem:[%s5935_s5 + $0xf4] sm:$0xf]  ;;  %v3356_v26 = vor.u32 %v4010_v59, %v3355_v38  ;;  %v3049_v38 = vld [vmem:[%s5935_s5 + $0xcc] sm:$0xf0] }
 0x212   :  { %v3052_v59 = vor.u32 %v3964_v9, %v3049_v38  ;;  %v3959_v9 = vld [vmem:[%s5935_s5 + $0x98] sm:$0xf0]  ;;  %v3998_v38 = vld [vmem:[%s5935_s5 + $0x1d0] sm:$0xf0] }
 0x213   :  { %v4858_v31 = vpop.f32.mrf.mxu2  ;;  %v4860_v19 = vpop.f32.mrf.mxu3  ;;  %1320 = vmatpush.bf16.msrb.mxu1 %v3100_v21  ;;  %v3073_v21 = vld [vmem:[%s5935_s5 + $0xfc] sm:$0xf0]  ;;  %1677 = vmatpush.bf16.msrb.mxu2 %v3356_v26  ;;  %v3987_v26 = vld [vmem:[%s5935_s5 + $0x178] sm:$0xf0] }
 0x214   :  { %v3076_v45 = vor.u32 %v3970_v20, %v3073_v21  ;;  %v3139_v20 = vld [vmem:[%s5935_s5 + $0x170] sm:$0xf]  ;;  %v3227_v21 = vld [vmem:[%s5935_s5 + $0xa8] sm:$0xf] }
 0x217   :  { %1321 = vmatpush.bf16.msrb.mxu1 %v3088_v1  ;;  %1678 = vmatpush.bf16.msrb.mxu2 %v3344_v12  ;;  %v4004_v1 = vld [vmem:[%s5935_s5 + $0x200] sm:$0xf0]  ;;  %v4001_v12 = vld [vmem:[%s5935_s5 + $0x1e8] sm:$0xf0] }
 0x218   :  { %v3332_v2 = vor.u32 %v4004_v1, %v3331_v0 }
 0x21b   :  { %v4868_v34 = vpop.f32.mrf.mxu2  ;;  %v4870_v22 = vpop.f32.mrf.mxu3  ;;  %1322 = vmatpush.bf16.msrb.mxu1 %v3076_v45  ;;  %1679 = vmatpush.bf16.msrb.mxu2 %v3332_v2  ;;  %v3140_v45 = vor.u32 %v3987_v26, %v3139_v20  ;;  %v3984_v2 = vld [vmem:[%s5935_s5 + $0x160] sm:$0xf0]  ;;  %v4006_v26 = vld [vmem:[%s5935_s5 + $0x214] sm:$0xf] }
 0x21f   :  { %1323 = vmatpush.bf16.msrb.mxu1 %v3064_v55  ;;  %v3127_v55 = vld [vmem:[%s5935_s5 + $0x158] sm:$0xf] }
 0x220   :  { %1016 = vmatmul.bf16.gmra.mxu2 %v4626_v5  ;;  %1055 = vmatmul.bf16.gmra.mxu3 %v4626_v5  ;;  %v3974_v5 = vld [vmem:[%s5935_s5 + $0x110] sm:$0xf0] }
 0x221   :  { %v3084_v41 = vor.u32 %v3974_v5, %v3083_v39  ;;  %v3059_v5 = vld [vmem:[%s5935_s5 + $0xd8] sm:$0xf] }
 0x223   :  { %v4874_v23 = vpop.f32.mrf.mxu2  ;;  %v4876_v36 = vpop.f32.mrf.mxu3  ;;  %1308 = vmatpush.bf16.msrb.mxu0 %v3084_v41  ;;  %v3968_v41 = vld [vmem:[%s5935_s5 + $0xe0] sm:$0xf0]  ;;  %1324 = vmatpush.bf16.msrb.mxu1 %v3052_v59 }
 0x224   :  { %v3060_v40 = vor.u32 %v3968_v41, %v3059_v5  ;;  %v3228_v5 = vor.u32 %v3962_v47, %v3227_v21  ;;  %v3320_v41 = vor.u32 %v4001_v12, %v3319_v10  ;;  %v3345_v21 = vld [vmem:[%s5935_s5 + $0x21c] sm:$0xf0]  ;;  %v3981_v10 = vld [vmem:[%s5935_s5 + $0x148] sm:$0xf0] }
 0x225   :  { %v3115_v47 = vld [vmem:[%s5935_s5 + $0x140] sm:$0xf] }
 0x226   :  { %1680 = vmatpush.bf16.msrb.mxu2 %v3320_v41  ;;  %v3116_v12 = vor.u32 %v3981_v10, %v3115_v47  ;;  %v3956_v41 = vld [vmem:[%s5935_s5 + $0x80] sm:$0xf0] }
 0x227   :  { %1309 = vmatpush.bf16.msrb.mxu0 %v3072_v29  ;;  %1471 = vmatpush.bf16.msra.mxu1 %v3228_v5  ;;  %v3203_v5 = vld [vmem:[%s5935_s5 + $0x78] sm:$0xf]  ;;  %v3992_v47 = vld [vmem:[%s5935_s5 + $0x1a0] sm:$0xf0] }
 0x22b   :  { %v4880_v25 = vpop.f32.mrf.mxu2  ;;  %v4882_v62 = vpop.f32.mrf.mxu3  ;;  %1310 = vmatpush.bf16.msrb.mxu0 %v3060_v40  ;;  %v3357_v40 = vld [vmem:[%s5935_s5 + $0x234] sm:$0xf0] }
 0x22c   :  { %v3360_v1 = vor.u32 %v4009_v14, %v3357_v40  ;;  %v3295_v14 = vld [vmem:[%s5935_s5 + $0x1b0] sm:$0xf]  ;;  %v3204_v40 = vor.u32 %v3956_v41, %v3203_v5  ;;  %v4000_v5 = vld [vmem:[%s5935_s5 + $0x1e4] sm:$0xf] }
 0x22d   :  { %v3321_v41 = vld [vmem:[%s5935_s5 + $0x1ec] sm:$0xf0] }
 0x22e   :  { %1690 = vmatpush.bf16.msrb.mxu3 %v3360_v1  ;;  %v3995_v1 = vld [vmem:[%s5935_s5 + $0x1b8] sm:$0xf0] }
 0x230   :  { %1021 = vmatmul.bf16.gmra.mxu2 %v4647_v35  ;;  %1060 = vmatmul.bf16.gmra.mxu3 %v4647_v35 }
 0x233   :  { %v4893_v42 = vpop.f32.mrf.mxu2  ;;  %v4895_v15 = vpop.f32.mrf.mxu3 }
 0x23b   :  { %v4903_v30 = vpop.f32.mrf.mxu2  ;;  %v4905_v35 = vpop.f32.mrf.mxu3 }
 0x240   :  { %1026 = vmatmul.bf16.gmra.mxu2 %v911_v32  ;;  %1065 = vmatmul.bf16.gmra.mxu3 %v911_v32  ;;  %v3047_v32 = vld [vmem:[%s5935_s5 + $0xc0] sm:$0xf] }
 0x241   :  { %v3048_v29 = vor.u32 %v3965_v8, %v3047_v32  ;;  %v3215_v32 = vld [vmem:[%s5935_s5 + $0x90] sm:$0xf]  ;;  %v3128_v8 = vor.u32 %v3984_v2, %v3127_v55  ;;  %v4003_v55 = vld [vmem:[%s5935_s5 + $0x1fc] sm:$0xf]  ;;  %v3333_v2 = vld [vmem:[%s5935_s5 + $0x204] sm:$0xf0] }
 0x242   :  { %v3216_v59 = vor.u32 %v3959_v9, %v3215_v32  ;;  %v3296_v9 = vor.u32 %v3995_v1, %v3295_v14  ;;  %v3324_v14 = vor.u32 %v4000_v5, %v3321_v41  ;;  %v3975_v1 = vld [vmem:[%s5935_s5 + $0x118] sm:$0xf0]  ;;  %v3485_v5 = vld [vmem:[%s5935_s5 + $0x2f4] sm:$0xf0] }
 0x243   :  { %v4909_v33 = vpop.f32.mrf.mxu2  ;;  %v4911_v3 = vpop.f32.mrf.mxu3  ;;  %1311 = vmatpush.bf16.msrb.mxu0 %v3048_v29  ;;  %v3307_v29 = vld [vmem:[%s5935_s5 + $0x1c8] sm:$0xf] }
 0x244   :  { %v3308_v20 = vor.u32 %v3998_v38, %v3307_v29  ;;  %1472 = vmatpush.bf16.msra.mxu1 %v3216_v59  ;;  %v3336_v29 = vor.u32 %v4003_v55, %v3333_v2  ;;  %v3103_v38 = vld [vmem:[%s5935_s5 + $0x128] sm:$0xf]  ;;  %v3978_v59 = vld [vmem:[%s5935_s5 + $0x130] sm:$0xf0] }
 0x245   :  { %v3179_v55 = vld [vmem:[%s5935_s5 + $0x48] sm:$0xf] }
 0x246   :  { %1681 = vmatpush.bf16.msrb.mxu2 %v3308_v20  ;;  %v3191_v20 = vld [vmem:[%s5935_s5 + $0x60] sm:$0xf] }
 0x247   :  { %1330 = vmatpush.bf16.msra.mxu0 %v3140_v45  ;;  %v3348_v45 = vor.u32 %v4006_v26, %v3345_v21  ;;  %v3104_v26 = vor.u32 %v3978_v59, %v3103_v38  ;;  %v3953_v21 = vld [vmem:[%s5935_s5 + $0x68] sm:$0xf0] }
 0x248   :  { %1473 = vmatpush.bf16.msra.mxu1 %v3204_v40  ;;  %v3192_v10 = vor.u32 %v3953_v21, %v3191_v20  ;;  %v3091_v40 = vld [vmem:[%s5935_s5 + $0x110] sm:$0xf]  ;;  %v3989_v38 = vld [vmem:[%s5935_s5 + $0x188] sm:$0xf0]  ;;  %v3309_v21 = vld [vmem:[%s5935_s5 + $0x1d4] sm:$0xf0] }
 0x249   :  { %1691 = vmatpush.bf16.msrb.mxu3 %v3348_v45  ;;  %v3283_v45 = vld [vmem:[%s5935_s5 + $0x198] sm:$0xf]  ;;  %v3092_v2 = vor.u32 %v3975_v1, %v3091_v40  ;;  %v3972_v40 = vld [vmem:[%s5935_s5 + $0x100] sm:$0xf0]  ;;  %v3167_v1 = vld [vmem:[%s5935_s5 + $0x30] sm:$0xf] }
 0x24a   :  { %1682 = vmatpush.bf16.msrb.mxu2 %v3296_v9  ;;  %v3950_v9 = vld [vmem:[%s5935_s5 + $0x50] sm:$0xf0] }
 0x24b   :  { %v4919_v60 = vpop.f32.mrf.mxu2  ;;  %v4921_v37 = vpop.f32.mrf.mxu3  ;;  %1331 = vmatpush.bf16.msra.mxu0 %v3128_v8  ;;  %v3180_v59 = vor.u32 %v3950_v9, %v3179_v55  ;;  %v3994_v9 = vld [vmem:[%s5935_s5 + $0x1b4] sm:$0xf] }
 0x24c   :  { %1474 = vmatpush.bf16.msra.mxu1 %v3192_v10 }
 0x24d   :  { %1692 = vmatpush.bf16.msrb.mxu3 %v3336_v29  ;;  %v3271_v29 = vld [vmem:[%s5935_s5 + $0x180] sm:$0xf] }
 0x24e   :  { %v3272_v20 = vor.u32 %v3989_v38, %v3271_v29  ;;  %v3297_v29 = vld [vmem:[%s5935_s5 + $0x1bc] sm:$0xf0] }
 0x24f   :  { %1332 = vmatpush.bf16.msra.mxu0 %v3116_v12  ;;  %v3284_v12 = vor.u32 %v3992_v47, %v3283_v45  ;;  %v4033_v45 = vld [vmem:[%s5935_s5 + $0x2ec] sm:$0xf] }
 0x250   :  { %1475 = vmatpush.bf16.msra.mxu1 %v3180_v59  ;;  %v3488_v41 = vor.u32 %v4033_v45, %v3485_v5  ;;  %v3300_v59 = vor.u32 %v3994_v9, %v3297_v29  ;;  %v3067_v45 = vld [vmem:[%s5935_s5 + $0xe0] sm:$0xf]  ;;  %v3155_v5 = vld [vmem:[%s5935_s5 + $0x18] sm:$0xf]  ;;  %v4027_v9 = vld [vmem:[%s5935_s5 + $0x2bc] sm:$0xf] }
 0x251   :  { %1683 = vmatpush.bf16.msrb.mxu2 %v3284_v12  ;;  %1693 = vmatpush.bf16.msrb.mxu3 %v3324_v14  ;;  %v3079_v14 = vld [vmem:[%s5935_s5 + $0xf8] sm:$0xf]  ;;  %v3461_v29 = vld [vmem:[%s5935_s5 + $0x2c4] sm:$0xf0] }
 0x252   :  { %v3080_v55 = vor.u32 %v3972_v40, %v3079_v14  ;;  %v3944_v14 = vld [vmem:[%s5935_s5 + $0x20] sm:$0xf0]  ;;  %v3991_v40 = vld [vmem:[%s5935_s5 + $0x19c] sm:$0xf] }
 0x253   :  { %v4941_v24 = vpop.f32.mrf.mxu2  ;;  %v4943_v39 = vpop.f32.mrf.mxu3  ;;  %1333 = vmatpush.bf16.msra.mxu0 %v3104_v26  ;;  %v3997_v26 = vld [vmem:[%s5935_s5 + $0x1cc] sm:$0xf] }
 0x254   :  { %v3312_v12 = vor.u32 %v3997_v26, %v3309_v21  ;;  %v3473_v26 = vld [vmem:[%s5935_s5 + $0x2dc] sm:$0xf0] }
 0x255   :  { %1684 = vmatpush.bf16.msrb.mxu2 %v3272_v20  ;;  %v4030_v20 = vld [vmem:[%s5935_s5 + $0x2d4] sm:$0xf] }
 0x256   :  { %1694 = vmatpush.bf16.msrb.mxu3 %v3312_v12  ;;  %v3476_v21 = vor.u32 %v4030_v20, %v3473_v26  ;;  %v3969_v12 = vld [vmem:[%s5935_s5 + $0xe8] sm:$0xf0]  ;;  %v3464_v20 = vor.u32 %v4027_v9, %v3461_v29  ;;  %v3055_v26 = vld [vmem:[%s5935_s5 + $0xc8] sm:$0xf]  ;;  %v3491_v29 = vld [vmem:[%s5935_s5 + $0x2f0] sm:$0xf] }
 0x257   :  { %1334 = vmatpush.bf16.msra.mxu0 %v3092_v2  ;;  %v3947_v2 = vld [vmem:[%s5935_s5 + $0x38] sm:$0xf0] }
 0x258   :  { %v3168_v38 = vor.u32 %v3947_v2, %v3167_v1  ;;  %v3285_v1 = vld [vmem:[%s5935_s5 + $0x1a4] sm:$0xf0] }
 0x259   :  { %1899 = vmatpush.bf16.msra.mxu2 %v3488_v41  ;;  %v3068_v41 = vor.u32 %v3969_v12, %v3067_v45  ;;  %v3288_v2 = vor.u32 %v3991_v40, %v3285_v1  ;;  %v3143_v45 = vld [vmem:[%s5935_s5] sm:$0xf]  ;;  %v3273_v40 = vld [vmem:[%s5935_s5 + $0x18c] sm:$0xf0]  ;;  %v4024_v1 = vld [vmem:[%s5935_s5 + $0x2a4] sm:$0xf] }
 0x25a   :  { %1476 = vmatpush.bf16.msra.mxu1 %v3168_v38  ;;  %1695 = vmatpush.bf16.msrb.mxu3 %v3300_v59 }
 0x25b   :  { %v4999_v44 = vpop.f32.mrf.mxu2  ;;  %v5001_v0 = vpop.f32.mrf.mxu3  ;;  %1335 = vmatpush.bf16.msra.mxu0 %v3080_v55  ;;  %v3156_v55 = vor.u32 %v3944_v14, %v3155_v5  ;;  %v3941_v5 = vld [vmem:[%s5935_s5 + $0x8] sm:$0xf0]  ;;  %v3988_v14 = vld [vmem:[%s5935_s5 + $0x184] sm:$0xf] }
 0x25d   :  { %1900 = vmatpush.bf16.msra.mxu2 %v3476_v21  ;;  %v3966_v21 = vld [vmem:[%s5935_s5 + $0xd0] sm:$0xf0] }
 0x25e   :  { %1477 = vmatpush.bf16.msra.mxu1 %v3156_v55  ;;  %1696 = vmatpush.bf16.msrb.mxu3 %v3288_v2  ;;  %v3056_v12 = vor.u32 %v3966_v21, %v3055_v26  ;;  %v3449_v55 = vld [vmem:[%s5935_s5 + $0x2ac] sm:$0xf0]  ;;  %v3276_v2 = vor.u32 %v3988_v14, %v3273_v40  ;;  %v824_v26 = vadd.f32 %v4858_v31, %v4696_v49  ;;  %v4021_v49 = vld [vmem:[%s5935_s5 + $0x28c] sm:$0xf] }
 0x25f   :  { %1336 = vmatpush.bf16.msra.mxu0 %v3068_v41  ;;  %v3144_v41 = vor.u32 %v3941_v5, %v3143_v45  ;;  %v3452_v9 = vor.u32 %v4024_v1, %v3449_v55  ;;  %v863_v45 = vadd.f32 %v4860_v19, %v4698_v50  ;;  %v865_v5 = vadd.f32 %v4870_v22, %v4714_v56  ;;  %v3437_v50 = vld [vmem:[%s5935_s5 + $0x294] sm:$0xf0]  ;;  %v4032_v22 = vld [vmem:[%s5935_s5 + $0x2e0] sm:$0xf0] }
 0x260   :  { %v3479_v56 = vld [vmem:[%s5935_s5 + $0x2d8] sm:$0xf] }
 0x261   :  { %1901 = vmatpush.bf16.msra.mxu2 %v3464_v20  ;;  %v4035_v20 = vld [vmem:[%s5935_s5 + $0x2f8] sm:$0xf0] }
 0x262   :  { %1478 = vmatpush.bf16.msra.mxu1 %v3144_v41  ;;  %v3492_v21 = vor.u32 %v4035_v20, %v3491_v29  ;;  %1697 = vmatpush.bf16.msrb.mxu3 %v3276_v2  ;;  %v3425_v2 = vld [vmem:[%s5935_s5 + $0x27c] sm:$0xf0] }
 0x263   :  { %v5051_v32 = vpop.f32.mrf.mxu2  ;;  %v5053_v8 = vpop.f32.mrf.mxu3  ;;  %1337 = vmatpush.bf16.msra.mxu0 %v3056_v12  ;;  %v826_v12 = vadd.f32 %v4868_v34, %v4712_v4  ;;  %v3440_v34 = vor.u32 %v4021_v49, %v3437_v50  ;;  %v3467_v20 = vld [vmem:[%s5935_s5 + $0x2c0] sm:$0xf] }
 0x265   :  { %1902 = vmatpush.bf16.msra.mxu2 %v3452_v9 }
 0x266   :  { %1912 = vmatpush.bf16.msra.mxu3 %v3492_v21 }
 0x269   :  { %1903 = vmatpush.bf16.msra.mxu2 %v3440_v34  ;;  %v3443_v34 = vld [vmem:[%s5935_s5 + $0x290] sm:$0xf] }
 0x26b   :  { %v5106_v47 = vpop.f32.mrf.mxu2  ;;  %v5108_v10 = vpop.f32.mrf.mxu3 }
 0x273   :  { %v1002_v38 = vpop.f32.mrf.mxu2  ;;  %v1041_v59 = vpop.f32.mrf.mxu3 }
 0x274   :  { %v1071_v41 = vadd.f32 %v1002_v38, %v824_v26  ;;  %v1072_v31 = vadd.f32 %v1041_v59, %v863_v45  ;;  %v3480_v38 = vor.u32 %v4032_v22, %v3479_v56  ;;  %v4018_v59 = vld [vmem:[%s5935_s5 + $0x274] sm:$0xf]  ;;  %v4029_v26 = vld [vmem:[%s5935_s5 + $0x2c8] sm:$0xf0]  ;;  %v4023_v56 = vld [vmem:[%s5935_s5 + $0x298] sm:$0xf0] }
 0x275   :  { %v3428_v29 = vor.u32 %v4018_v59, %v3425_v2  ;;  %v3468_v21 = vor.u32 %v4029_v26, %v3467_v20  ;;  %v3444_v22 = vor.u32 %v4023_v56, %v3443_v34  ;;  %v870_v59 = vadd.f32 %v4882_v62, %v4781_v61  ;;  %v5266_v61 = vld [vmem:[%s5936_s4] ss:$0 sm:$0xff] }
 0x276   :  { %1913 = vmatpush.bf16.msra.mxu3 %v3480_v38  ;;  %v829_v38 = vadd.f32 %v4874_v23, %v4745_v57  ;;  %v3431_v57 = vld [vmem:[%s5935_s5 + $0x278] sm:$0xf]  ;;  %v3419_v62 = vld [vmem:[%s5935_s5 + $0x260] sm:$0xf] }
 0x277   :  { %1904 = vmatpush.bf16.msra.mxu2 %v3428_v29 }
 0x27a   :  { %1914 = vmatpush.bf16.msra.mxu3 %v3468_v21 }
 0x27b   :  { %v1004_v14 = vpop.f32.mrf.mxu2  ;;  %v1043_v40 = vpop.f32.mrf.mxu3 }
 0x27c   :  { %v1073_v19 = vadd.f32 %v1004_v14, %v826_v12  ;;  %v1074_v4 = vadd.f32 %v1043_v40, %v865_v5  ;;  %v4015_v5 = vld [vmem:[%s5935_s5 + $0x25c] sm:$0xf]  ;;  %v3455_v14 = vld [vmem:[%s5935_s5 + $0x2a8] sm:$0xf]  ;;  %v4026_v40 = vld [vmem:[%s5935_s5 + $0x2b0] sm:$0xf0] }
 0x27d   :  { %v3456_v50 = vor.u32 %v4026_v40, %v3455_v14  ;;  %v3229_v40 = vld [vmem:[%s5935_s5 + $0xb4] sm:$0xf0] }
 0x27e   :  { %v1096_v1 = vmax.f32 %v1071_v41, %v1073_v19  ;;  %v1097_v55 = vmax.f32 %v1072_v31, %v1074_v4  ;;  %v3413_v41 = vld [vmem:[%s5935_s5 + $0x264] sm:$0xf0]  ;;  %v4012_v31 = vld [vmem:[%s5935_s5 + $0x244] sm:$0xf]  ;;  %v3401_v19 = vld [vmem:[%s5935_s5 + $0x24c] sm:$0xf0] }
 0x27f   :  { %v3416_v49 = vor.u32 %v4015_v5, %v3413_v41  ;;  %1915 = vmatpush.bf16.msra.mxu3 %v3456_v50  ;;  %v3404_v4 = vor.u32 %v4012_v31, %v3401_v19  ;;  %v3963_v50 = vld [vmem:[%s5935_s5 + $0xb8] sm:$0xf0] }
 0x280   :  { %v5217_v9 = vmax.f32 %v1096_v1, %v1097_v55  ;;  %v868_v1 = vadd.f32 %v4876_v36, %v4747_v58  ;;  %v831_v55 = vadd.f32 %v4880_v25, %v4779_v11  ;;  %v4020_v58 = vld [vmem:[%s5935_s5 + $0x280] sm:$0xf0] }
 0x281   :  { %1905 = vmatpush.bf16.msra.mxu2 %v3416_v49  ;;  %v3432_v11 = vor.u32 %v4020_v58, %v3431_v57  ;;  %v3235_v49 = vld [vmem:[%s5935_s5 + $0xb0] sm:$0xf]  ;;  %v834_v57 = vadd.f32 %v4893_v42, %v4788_v43  ;;  %v873_v58 = vadd.f32 %v4895_v15, %v4790_v13  ;;  %v3957_v43 = vld [vmem:[%s5935_s5 + $0x88] sm:$0xf0] }
 0x282   :  { %v3236_v56 = vor.u32 %v3963_v50, %v3235_v49  ;;  %v3199_v49 = vld [vmem:[%s5935_s5 + $0x68] sm:$0xf] }
 0x283   :  { %v1007_v45 = vpop.f32.mrf.mxu2  ;;  %v1046_v12 = vpop.f32.mrf.mxu3  ;;  %1916 = vmatpush.bf16.msra.mxu3 %v3444_v22  ;;  %v3958_v22 = vld [vmem:[%s5935_s5 + $0x94] sm:$0xf] }
 0x284   :  { %v1075_v20 = vadd.f32 %v1007_v45, %v829_v38  ;;  %v1076_v26 = vadd.f32 %v1046_v12, %v868_v1  ;;  %v4017_v45 = vld [vmem:[%s5935_s5 + $0x268] sm:$0xf0]  ;;  %v3217_v38 = vld [vmem:[%s5935_s5 + $0x9c] sm:$0xf0]  ;;  %v3223_v1 = vld [vmem:[%s5935_s5 + $0x98] sm:$0xf] }
 0x285   :  { %1906 = vmatpush.bf16.msra.mxu2 %v3404_v4  ;;  %v3961_v12 = vld [vmem:[%s5935_s5 + $0xac] sm:$0xf]  ;;  %v3420_v41 = vor.u32 %v4017_v45, %v3419_v62 }
 0x286   :  { %v3232_v34 = vor.u32 %v3961_v12, %v3229_v40  ;;  %v3952_v12 = vld [vmem:[%s5935_s5 + $0x64] sm:$0xf]  ;;  %v3193_v40 = vld [vmem:[%s5935_s5 + $0x6c] sm:$0xf0] }
 0x287   :  { %1917 = vmatpush.bf16.msra.mxu3 %v3432_v11  ;;  %v836_v11 = vadd.f32 %v4903_v30, %v4798_v46 }
 0x28b   :  { %v1009_v2 = vpop.f32.mrf.mxu2  ;;  %v1048_v29 = vpop.f32.mrf.mxu3  ;;  %1918 = vmatpush.bf16.msra.mxu3 %v3420_v41 }
 0x28c   :  { %v1077_v21 = vadd.f32 %v1009_v2, %v831_v55  ;;  %v1078_v5 = vadd.f32 %v1048_v29, %v870_v59  ;;  %v3960_v59 = vld [vmem:[%s5935_s5 + $0xa0] sm:$0xf0]  ;;  %v3407_v2 = vld [vmem:[%s5935_s5 + $0x248] sm:$0xf]  ;;  %v4014_v29 = vld [vmem:[%s5935_s5 + $0x250] sm:$0xf0] }
 0x28e   :  { %v1137_v23 = vmax.f32 %v1075_v20, %v1077_v21  ;;  %v1138_v36 = vmax.f32 %v1076_v26, %v1078_v5  ;;  %v3408_v20 = vor.u32 %v4014_v29, %v3407_v2  ;;  %v3220_v26 = vor.u32 %v3958_v22, %v3217_v38  ;;  %v3955_v5 = vld [vmem:[%s5935_s5 + $0x7c] sm:$0xf]  ;;  %v3181_v22 = vld [vmem:[%s5935_s5 + $0x54] sm:$0xf0]  ;;  %v3187_v38 = vld [vmem:[%s5935_s5 + $0x50] sm:$0xf] }
 0x28f   :  { %v3224_v21 = vor.u32 %v3960_v59, %v3223_v1  ;;  %v3951_v1 = vld [vmem:[%s5935_s5 + $0x58] sm:$0xf0]  ;;  %v3619_v29 = vld [vmem:[%s5935_s5 + $0x3b0] sm:$0xf] }
 0x290   :  { %v1139_v25 = vmax.f32 %v1137_v23, %v1138_v36  ;;  %v875_v23 = vadd.f32 %v4905_v35, %v4800_v48  ;;  %v3205_v36 = vld [vmem:[%s5935_s5 + $0x84] sm:$0xf0]  ;;  %1919 = vmatpush.bf16.msra.mxu3 %v3408_v20  ;;  %v1102_v48 = vadd.f32 %v5266_v61, %v5217_v9  ;;  %v3954_v9 = vld [vmem:[%s5935_s5 + $0x70] sm:$0xf0]  ;;  %v4059_v20 = vld [vmem:[%s5935_s5 + $0x3b8] sm:$0xf0] }
 0x291   :  { %v3208_v35 = vor.u32 %v3955_v5, %v3205_v36  ;;  %v4082_v5 = vld [vmem:[%s5935_s5 + $0x470] sm:$0xf0] }
 0x292   :  { %v1140_v14 = vadd.f32 %v5266_v61, %v1139_v25  ;;  %v3211_v25 = vld [vmem:[%s5935_s5 + $0x80] sm:$0xf] }
 0x293   :  { %v1012_v31 = vpop.f32.mrf.mxu2  ;;  %v1051_v19 = vpop.f32.mrf.mxu3  ;;  %v3212_v45 = vor.u32 %v3957_v43, %v3211_v25  ;;  %v3169_v25 = vld [vmem:[%s5935_s5 + $0x3c] sm:$0xf0]  ;;  %v3175_v43 = vld [vmem:[%s5935_s5 + $0x38] sm:$0xf] }
 0x294   :  { %v1141_v4 = vmax.f32 %v1140_v14, 0.0  ;;  %v1079_v15 = vadd.f32 %v1012_v31, %v834_v57  ;;  %v1080_v46 = vadd.f32 %v1051_v19, %v873_v58  ;;  %v1103_v31 = vmax.f32 %v1102_v48, 0.0  ;;  %v4079_v48 = vld [vmem:[%s5935_s5 + $0x458] sm:$0xf0] }
 0x295   :  { %v3196_v19 = vor.u32 %v3952_v12, %v3193_v40  ;;  %v3188_v58 = vor.u32 %v3951_v1, %v3187_v38  ;;  %v3943_v12 = vld [vmem:[%s5935_s5 + $0x1c] sm:$0xf]  ;;  %v880_v40 = vadd.f32 %v4921_v37, %v4816_v16  ;;  %v3940_v38 = vld [vmem:[%s5935_s5 + $0x4] sm:$0xf]  ;;  %v3145_v1 = vld [vmem:[%s5935_s5 + $0xc] sm:$0xf0] }
 0x296   :  { %v5296_v55 = vpack.c.bf16 %v1141_v4, %v1141_v4  ;;  %v3200_v4 = vor.u32 %v3954_v9, %v3199_v49 }
 0x298   :  { %1312 = vmatmul.bf16.vlgmr.msrb.gmra.mxu0 %v5296_v55  ;;  %1325 = vmatmul.bf16.vlgmr.msrb.gmra.mxu1 %v5296_v55 }
 0x299   :  { %1484 = vmatpush.bf16.msrb.mxu0 %v3232_v34  ;;  %1497 = vmatpush.bf16.msrb.mxu1 %v3236_v56  ;;  %v3949_v34 = vld [vmem:[%s5935_s5 + $0x4c] sm:$0xf] }
 0x29a   :  { %v3184_v57 = vor.u32 %v3949_v34, %v3181_v22  ;;  %v4076_v34 = vld [vmem:[%s5935_s5 + $0x440] sm:$0xf0] }
 0x29b   :  { %v1014_v13 = vpop.f32.mrf.mxu2  ;;  %v1053_v42 = vpop.f32.mrf.mxu3 }
 0x29c   :  { %v1081_v30 = vadd.f32 %v1014_v13, %v836_v11  ;;  %v1082_v62 = vadd.f32 %v1053_v42, %v875_v23  ;;  %v3946_v11 = vld [vmem:[%s5935_s5 + $0x34] sm:$0xf]  ;;  %v5371_v23 = vpack.c.bf16 %v1103_v31, %v1103_v31  ;;  %v3948_v13 = vld [vmem:[%s5935_s5 + $0x40] sm:$0xf0]  ;;  %v3620_v42 = vor.u32 %v4059_v20, %v3619_v29 }
 0x29d   :  { %1485 = vmatpush.bf16.msrb.mxu0 %v3220_v26  ;;  %1498 = vmatpush.bf16.msrb.mxu1 %v3224_v21  ;;  %v3739_v21 = vld [vmem:[%s5935_s5 + $0x468] sm:$0xf]  ;;  %v3942_v20 = vld [vmem:[%s5935_s5 + $0x10] sm:$0xf0] }
 0x29e   :  { %v1510_v41 = vmax.f32 %v1079_v15, %v1081_v30  ;;  %v1511_v14 = vmax.f32 %v1080_v46, %v1082_v62  ;;  %v3607_v15 = vld [vmem:[%s5935_s5 + $0x398] sm:$0xf]  ;;  %v3740_v46 = vor.u32 %v4082_v5, %v3739_v21  ;;  %v4056_v30 = vld [vmem:[%s5935_s5 + $0x3a0] sm:$0xf0]  ;;  %v3727_v62 = vld [vmem:[%s5935_s5 + $0x450] sm:$0xf] }
 0x29f   :  { %v3608_v16 = vor.u32 %v4056_v30, %v3607_v15  ;;  %v3728_v37 = vor.u32 %v4079_v48, %v3727_v62  ;;  %v4011_v21 = vld [vmem:[%s5935_s5 + $0x238] sm:$0xf0]  ;;  %v4073_v15 = vld [vmem:[%s5935_s5 + $0x428] sm:$0xf0] }
 0x2a0   :  { %v1512_v50 = vmax.f32 %v1510_v41, %v1511_v14  ;;  %v878_v41 = vadd.f32 %v4911_v3, %v4812_v52  ;;  %v841_v14 = vadd.f32 %v4919_v60, %v4814_v53  ;;  %v3945_v52 = vld [vmem:[%s5935_s5 + $0x28] sm:$0xf0]  ;;  %v3595_v60 = vld [vmem:[%s5935_s5 + $0x380] sm:$0xf] }
 0x2a1   :  { %1486 = vmatpush.bf16.msrb.mxu0 %v3208_v35  ;;  %1499 = vmatpush.bf16.msrb.mxu1 %v3212_v45  ;;  %v839_v35 = vadd.f32 %v4909_v33, %v4810_v51  ;;  %v3176_v45 = vor.u32 %v3948_v13, %v3175_v43  ;;  %v3157_v51 = vld [vmem:[%s5935_s5 + $0x24] sm:$0xf0]  ;;  %v3163_v33 = vld [vmem:[%s5935_s5 + $0x20] sm:$0xf]  ;;  %v4050_v13 = vld [vmem:[%s5935_s5 + $0x370] sm:$0xf0] }
 0x2a2   :  { %v1513_v56 = vadd.f32 %v5266_v61, %v1512_v50  ;;  %v3164_v22 = vor.u32 %v3945_v52, %v3163_v33  ;;  %v4031_v52 = vld [vmem:[%s5935_s5 + $0x2d8] sm:$0xf0] }
 0x2a3   :  { %v1017_v59 = vpop.f32.mrf.mxu2  ;;  %v1056_v2 = vpop.f32.mrf.mxu3 }
 0x2a4   :  { %v1514_v26 = vmax.f32 %v1513_v56, 0.0  ;;  %v1083_v49 = vadd.f32 %v1017_v59, %v839_v35  ;;  %v1084_v9 = vadd.f32 %v1056_v2, %v878_v41  ;;  %v3160_v56 = vor.u32 %v3943_v12, %v3157_v51  ;;  %v3151_v59 = vld [vmem:[%s5935_s5 + $0x8] sm:$0xf]  ;;  %v3351_v41 = vld [vmem:[%s5935_s5 + $0x218] sm:$0xf] }
 0x2a5   :  { %1487 = vmatpush.bf16.msrb.mxu0 %v3196_v19  ;;  %1500 = vmatpush.bf16.msrb.mxu1 %v3200_v4  ;;  %v4053_v19 = vld [vmem:[%s5935_s5 + $0x388] sm:$0xf0]  ;;  %v3715_v4 = vld [vmem:[%s5935_s5 + $0x438] sm:$0xf]  ;;  %v3152_v30 = vor.u32 %v3942_v20, %v3151_v59  ;;  %v4067_v59 = vld [vmem:[%s5935_s5 + $0x3f8] sm:$0xf0]  ;;  %v885_v20 = vadd.f32 %v5001_v0, %v4832_v7 }
 0x2a6   :  { %v5373_v36 = vpack.c.bf16 %v1514_v26, %v1514_v26  ;;  %v3363_v26 = vld [vmem:[%s5935_s5 + $0x230] sm:$0xf]  ;;  %v3596_v5 = vor.u32 %v4053_v19, %v3595_v60  ;;  %v4070_v60 = vld [vmem:[%s5935_s5 + $0x410] sm:$0xf0]  ;;  %v3459_v19 = vld [vmem:[%s5935_s5 + $0x2b8] sm:$0xf] }
 0x2a7   :  { %v3364_v48 = vor.u32 %v4011_v21, %v3363_v26 }
 0x2a8   :  { %1338 = vmatmul.bf16.vlgmr.msra.gmra.mxu0 %v5296_v55  ;;  %1479 = vmatmul.bf16.vlgmr.msra.gmra.mxu1 %v5371_v23  ;;  %v3172_v55 = vor.u32 %v3946_v11, %v3169_v25  ;;  %v3583_v11 = vld [vmem:[%s5935_s5 + $0x368] sm:$0xf]  ;;  %v3716_v25 = vor.u32 %v4076_v34, %v3715_v4  ;;  %v4028_v4 = vld [vmem:[%s5935_s5 + $0x2c0] sm:$0xf0]  ;;  %v3559_v34 = vld [vmem:[%s5935_s5 + $0x338] sm:$0xf] }
 0x2a9   :  { %1488 = vmatpush.bf16.msrb.mxu0 %v3184_v57  ;;  %1501 = vmatpush.bf16.msrb.mxu1 %v3188_v58  ;;  %v3483_v57 = vld [vmem:[%s5935_s5 + $0x2e8] sm:$0xf]  ;;  %v4034_v58 = vld [vmem:[%s5935_s5 + $0x2f0] sm:$0xf0]  ;;  %v3584_v12 = vor.u32 %v4050_v13, %v3583_v11  ;;  %v3460_v21 = vor.u32 %v4028_v4, %v3459_v19  ;;  %v4025_v11 = vld [vmem:[%s5935_s5 + $0x2a8] sm:$0xf0] }
 0x2aa   :  { %1685 = vmatmul.bf16.vlgmr.msrb.gmra.mxu2 %v5373_v36  ;;  %1698 = vmatmul.bf16.vlgmr.msrb.gmra.mxu3 %v5373_v36  ;;  %v3484_v35 = vor.u32 %v4034_v58, %v3483_v57  ;;  %v3447_v58 = vld [vmem:[%s5935_s5 + $0x2a0] sm:$0xf]  ;;  %v3667_v13 = vld [vmem:[%s5935_s5 + $0x3d8] sm:$0xf]  ;;  %v3996_v19 = vld [vmem:[%s5935_s5 + $0x1c0] sm:$0xf0] }
 0x2ab   :  { %2121 = vmatpush.bf16.msrb.mxu2 %v3620_v42  ;;  %v1019_v53 = vpop.f32.mrf.mxu2  ;;  %v1058_v3 = vpop.f32.mrf.mxu3  ;;  %2304 = vmatpush.bf16.msrb.mxu3 %v3740_v46  ;;  %v3703_v42 = vld [vmem:[%s5935_s5 + $0x420] sm:$0xf]  ;;  %v3148_v46 = vor.u32 %v3940_v38, %v3145_v1  ;;  %v3679_v1 = vld [vmem:[%s5935_s5 + $0x3f0] sm:$0xf] }
 0x2ac   :  { %v1085_v50 = vadd.f32 %v1019_v53, %v841_v14  ;;  %v1086_v31 = vadd.f32 %v1058_v3, %v880_v40  ;;  %v4008_v14 = vld [vmem:[%s5935_s5 + $0x220] sm:$0xf0]  ;;  %v3471_v40 = vld [vmem:[%s5935_s5 + $0x2d0] sm:$0xf]  ;;  %v3704_v51 = vor.u32 %v4073_v15, %v3703_v42  ;;  %v4047_v3 = vld [vmem:[%s5935_s5 + $0x358] sm:$0xf0]  ;;  %v3680_v7 = vor.u32 %v4067_v59, %v3679_v1 }
 0x2ad   :  { %1489 = vmatpush.bf16.msrb.mxu0 %v3172_v55  ;;  %1502 = vmatpush.bf16.msrb.mxu1 %v3176_v45  ;;  %v3571_v53 = vld [vmem:[%s5935_s5 + $0x350] sm:$0xf]  ;;  %v4064_v42 = vld [vmem:[%s5935_s5 + $0x3e0] sm:$0xf0]  ;;  %v3291_v1 = vld [vmem:[%s5935_s5 + $0x1a0] sm:$0xf] }
 0x2ae   :  { %v1719_v2 = vmax.f32 %v1083_v49, %v1085_v50  ;;  %v1720_v29 = vmax.f32 %v1084_v9, %v1086_v31  ;;  %v3339_v49 = vld [vmem:[%s5935_s5 + $0x200] sm:$0xf]  ;;  %v4005_v9 = vld [vmem:[%s5935_s5 + $0x208] sm:$0xf0]  ;;  %v3352_v50 = vor.u32 %v4008_v14, %v3351_v41  ;;  %v3472_v31 = vor.u32 %v4031_v52, %v3471_v40  ;;  %v4022_v41 = vld [vmem:[%s5935_s5 + $0x290] sm:$0xf0] }
 0x2af   :  { %2122 = vmatpush.bf16.msrb.mxu2 %v3608_v16  ;;  %2305 = vmatpush.bf16.msrb.mxu3 %v3728_v37  ;;  %v3691_v16 = vld [vmem:[%s5935_s5 + $0x408] sm:$0xf]  ;;  %v3340_v26 = vor.u32 %v4005_v9, %v3339_v49  ;;  %v3668_v40 = vor.u32 %v4064_v42, %v3667_v13  ;;  %v4061_v52 = vld [vmem:[%s5935_s5 + $0x3c8] sm:$0xf0] }
 0x2b0   :  { %v1721_v43 = vmax.f32 %v1719_v2, %v1720_v29  ;;  %v3692_v38 = vor.u32 %v4070_v60, %v3691_v16  ;;  %v844_v2 = vadd.f32 %v4941_v24, %v4820_v17  ;;  %v846_v29 = vadd.f32 %v4999_v44, %v4830_v63  ;;  %v4002_v63 = vld [vmem:[%s5935_s5 + $0x1f0] sm:$0xf0]  ;;  %v3535_v14 = vld [vmem:[%s5935_s5 + $0x308] sm:$0xf] }
 0x2b1   :  { %1490 = vmatpush.bf16.msrb.mxu0 %v3160_v56  ;;  %1503 = vmatpush.bf16.msrb.mxu1 %v3164_v22  ;;  %v3572_v56 = vor.u32 %v4047_v3, %v3571_v53  ;;  %v4044_v22 = vld [vmem:[%s5935_s5 + $0x340] sm:$0xf0] }
 0x2b2   :  { %v1722_v62 = vadd.f32 %v5266_v61, %v1721_v43  ;;  %v3560_v24 = vor.u32 %v4044_v22, %v3559_v34  ;;  %v4041_v43 = vld [vmem:[%s5935_s5 + $0x328] sm:$0xf0]  ;;  %v3423_v34 = vld [vmem:[%s5935_s5 + $0x270] sm:$0xf] }
 0x2b3   :  { %2123 = vmatpush.bf16.msrb.mxu2 %v3596_v5  ;;  %v1022_v55 = vpop.f32.mrf.mxu2  ;;  %v1061_v45 = vpop.f32.mrf.mxu3  ;;  %2306 = vmatpush.bf16.msrb.mxu3 %v3716_v25  ;;  %v3547_v25 = vld [vmem:[%s5935_s5 + $0x320] sm:$0xf] }
 0x2b4   :  { %v1723_v33 = vmax.f32 %v1722_v62, 0.0  ;;  %v1087_v5 = vadd.f32 %v1022_v55, %v844_v2  ;;  %v3448_v62 = vor.u32 %v4025_v11, %v3447_v58  ;;  %v3993_v2 = vld [vmem:[%s5935_s5 + $0x1a8] sm:$0xf0]  ;;  %v3613_v58 = vld [vmem:[%s5935_s5 + $0x3b4] sm:$0xf0] }
 0x2b5   :  { %1491 = vmatpush.bf16.msrb.mxu0 %v3148_v46  ;;  %1504 = vmatpush.bf16.msrb.mxu1 %v3152_v30 }
 0x2b6   :  { %v5493_v37 = vpack.c.bf16 %v1723_v33, %v1723_v33  ;;  %v3655_v33 = vld [vmem:[%s5935_s5 + $0x3c0] sm:$0xf] }
 0x2b7   :  { %2124 = vmatpush.bf16.msrb.mxu2 %v3584_v12  ;;  %2307 = vmatpush.bf16.msrb.mxu3 %v3704_v51  ;;  %v3435_v12 = vld [vmem:[%s5935_s5 + $0x288] sm:$0xf]  ;;  %v4038_v51 = vld [vmem:[%s5935_s5 + $0x310] sm:$0xf0]  ;;  %v3656_v4 = vor.u32 %v4061_v52, %v3655_v33  ;;  %v4049_v52 = vld [vmem:[%s5935_s5 + $0x368] sm:$0xf0] }
 0x2b8   :  { %1492 = vmatmul.bf16.vlgmr.msrb.gmra.mxu0 %v5371_v23  ;;  %1505 = vmatmul.bf16.vlgmr.msrb.gmra.mxu1 %v5371_v23  ;;  %v883_v23 = vadd.f32 %v4943_v39, %v4822_v54  ;;  %v3327_v54 = vld [vmem:[%s5935_s5 + $0x1e8] sm:$0xf]  ;;  %v3436_v49 = vor.u32 %v4022_v41, %v3435_v12  ;;  %v3587_v12 = vld [vmem:[%s5935_s5 + $0x378] sm:$0xf] }
 0x2b9   :  { %1703 = vmatpush.bf16.msra.mxu0 %v3364_v48  ;;  %1886 = vmatpush.bf16.msra.mxu1 %v3484_v35  ;;  %v3328_v30 = vor.u32 %v4002_v63, %v3327_v54  ;;  %v3315_v48 = vld [vmem:[%s5935_s5 + $0x1d0] sm:$0xf]  ;;  %v3999_v35 = vld [vmem:[%s5935_s5 + $0x1d8] sm:$0xf0] }
 0x2ba   :  { %1907 = vmatmul.bf16.vlgmr.msra.gmra.mxu2 %v5493_v37  ;;  %1920 = vmatmul.bf16.vlgmr.msra.gmra.mxu3 %v5493_v37  ;;  %v1088_v39 = vadd.f32 %v1061_v45, %v883_v23  ;;  %v3548_v45 = vor.u32 %v4041_v43, %v3547_v25  ;;  %v3316_v60 = vor.u32 %v3999_v35, %v3315_v48  ;;  %v3411_v23 = vld [vmem:[%s5935_s5 + $0x258] sm:$0xf]  ;;  %v3601_v48 = vld [vmem:[%s5935_s5 + $0x39c] sm:$0xf0] }
 0x2bb   :  { %v1024_v57 = vpop.f32.mrf.mxu2  ;;  %v1063_v17 = vpop.f32.mrf.mxu3  ;;  %2125 = vmatpush.bf16.msrb.mxu2 %v3572_v56  ;;  %2308 = vmatpush.bf16.msrb.mxu3 %v3692_v38  ;;  %v4019_v56 = vld [vmem:[%s5935_s5 + $0x278] sm:$0xf0] }
 0x2bc   :  { %v1089_v44 = vadd.f32 %v1024_v57, %v846_v29  ;;  %v1090_v0 = vadd.f32 %v1063_v17, %v885_v20  ;;  %v3424_v59 = vor.u32 %v4019_v56, %v3423_v34  ;;  %v4016_v29 = vld [vmem:[%s5935_s5 + $0x260] sm:$0xf0]  ;;  %v849_v20 = vadd.f32 %v5051_v32, %v4842_v6  ;;  %v4043_v34 = vld [vmem:[%s5935_s5 + $0x338] sm:$0xf0]  ;;  %v4042_v56 = vld [vmem:[%s5935_s5 + $0x334] sm:$0xf] }
 0x2bd   :  { %1704 = vmatpush.bf16.msra.mxu0 %v3352_v50  ;;  %1887 = vmatpush.bf16.msra.mxu1 %v3472_v31  ;;  %v3536_v50 = vor.u32 %v4038_v51, %v3535_v14  ;;  %v3303_v31 = vld [vmem:[%s5935_s5 + $0x1b8] sm:$0xf]  ;;  %v3412_v54 = vor.u32 %v4016_v29, %v3411_v23  ;;  %v4051_v14 = vld [vmem:[%s5935_s5 + $0x37c] sm:$0xf]  ;;  %v4040_v23 = vld [vmem:[%s5935_s5 + $0x320] sm:$0xf0] }
 0x2be   :  { %v1928_v15 = vmax.f32 %v1087_v5, %v1089_v44  ;;  %v1929_v46 = vmax.f32 %v1088_v39, %v1090_v0  ;;  %v3304_v38 = vor.u32 %v3996_v19, %v3303_v31  ;;  %v890_v5 = vadd.f32 %v5108_v10, %v4848_v28  ;;  %v3399_v28 = vld [vmem:[%s5935_s5 + $0x240] sm:$0xf]  ;;  %v4058_v10 = vld [vmem:[%s5935_s5 + $0x3b0] sm:$0xf0]  ;;  %v4057_v0 = vld [vmem:[%s5935_s5 + $0x3ac] sm:$0xf] }
 0x2bf   :  { %2126 = vmatpush.bf16.msrb.mxu2 %v3560_v24  ;;  %2309 = vmatpush.bf16.msrb.mxu3 %v3680_v7  ;;  %v3292_v24 = vor.u32 %v3993_v2, %v3291_v1  ;;  %v3616_v42 = vor.u32 %v4057_v0, %v3613_v58  ;;  %v3539_v2 = vld [vmem:[%s5935_s5 + $0x318] sm:$0xf]  ;;  %v4039_v29 = vld [vmem:[%s5935_s5 + $0x31c] sm:$0xf] }
 0x2c0   :  { %v1930_v55 = vmax.f32 %v1928_v15, %v1929_v46  ;;  %v3599_v15 = vld [vmem:[%s5935_s5 + $0x390] sm:$0xf]  ;;  %v4055_v46 = vld [vmem:[%s5935_s5 + $0x398] sm:$0xf0] }
 0x2c1   :  { %1705 = vmatpush.bf16.msra.mxu0 %v3340_v26  ;;  %1888 = vmatpush.bf16.msra.mxu1 %v3460_v21  ;;  %v888_v26 = vadd.f32 %v5053_v8, %v4844_v18  ;;  %v851_v21 = vadd.f32 %v5106_v47, %v4846_v27  ;;  %v3279_v18 = vld [vmem:[%s5935_s5 + $0x188] sm:$0xf]  ;;  %v3990_v27 = vld [vmem:[%s5935_s5 + $0x190] sm:$0xf0]  ;;  %v4013_v8 = vld [vmem:[%s5935_s5 + $0x248] sm:$0xf0] }
 0x2c2   :  { %v1931_v53 = vadd.f32 %v5266_v61, %v1930_v55  ;;  %v3611_v47 = vld [vmem:[%s5935_s5 + $0x3a8] sm:$0xf]  ;;  %v3280_v11 = vor.u32 %v3990_v27, %v3279_v18  ;;  %v3400_v43 = vor.u32 %v4013_v8, %v3399_v28  ;;  %v3600_v55 = vor.u32 %v4055_v46, %v3599_v15  ;;  %v4078_v8 = vld [vmem:[%s5935_s5 + $0x454] sm:$0xf]  ;;  %v4075_v58 = vld [vmem:[%s5935_s5 + $0x43c] sm:$0xf] }
 0x2c3   :  { %v1027_v3 = vpop.f32.mrf.mxu2  ;;  %v1066_v16 = vpop.f32.mrf.mxu3  ;;  %2127 = vmatpush.bf16.msrb.mxu2 %v3548_v45  ;;  %2310 = vmatpush.bf16.msrb.mxu3 %v3668_v40  ;;  %v3612_v13 = vor.u32 %v4058_v10, %v3611_v47  ;;  %v3589_v40 = vld [vmem:[%s5935_s5 + $0x384] sm:$0xf0]  ;;  %v3729_v47 = vld [vmem:[%s5935_s5 + $0x45c] sm:$0xf0]  ;;  %v3735_v10 = vld [vmem:[%s5935_s5 + $0x458] sm:$0xf] }
 0x2c4   :  { %v1932_v9 = vmax.f32 %v1931_v53, 0.0  ;;  %v1091_v63 = vadd.f32 %v1027_v3, %v849_v20  ;;  %v1092_v7 = vadd.f32 %v1066_v16, %v888_v26  ;;  %v3592_v33 = vor.u32 %v4051_v14, %v3589_v40  ;;  %v4048_v53 = vld [vmem:[%s5935_s5 + $0x364] sm:$0xf]  ;;  %v3541_v20 = vld [vmem:[%s5935_s5 + $0x324] sm:$0xf0] }
 0x2c5   :  { %1706 = vmatpush.bf16.msra.mxu0 %v3328_v30  ;;  %1889 = vmatpush.bf16.msra.mxu1 %v3448_v62  ;;  %v4054_v62 = vld [vmem:[%s5935_s5 + $0x394] sm:$0xf]  ;;  %v3540_v26 = vor.u32 %v4040_v23, %v3539_v2  ;;  %v4072_v15 = vld [vmem:[%s5935_s5 + $0x424] sm:$0xf]  ;;  %v3705_v46 = vld [vmem:[%s5935_s5 + $0x42c] sm:$0xf0] }
 0x2c6   :  { %v5592_v22 = vpack.c.bf16 %v1932_v9, %v1932_v9  ;;  %v3604_v45 = vor.u32 %v4054_v62, %v3601_v48  ;;  %v4045_v9 = vld [vmem:[%s5935_s5 + $0x34c] sm:$0xf]  ;;  %v3708_v62 = vor.u32 %v4072_v15, %v3705_v46  ;;  %v4066_v40 = vld [vmem:[%s5935_s5 + $0x3f4] sm:$0xf] }
 0x2c7   :  { %2128 = vmatpush.bf16.msrb.mxu2 %v3536_v50  ;;  %2311 = vmatpush.bf16.msrb.mxu3 %v3656_v4  ;;  %v3565_v50 = vld [vmem:[%s5935_s5 + $0x354] sm:$0xf0]  ;;  %v3551_v4 = vld [vmem:[%s5935_s5 + $0x330] sm:$0xf] }
 0x2c8   :  { %v3568_v19 = vor.u32 %v4045_v9, %v3565_v50  ;;  %v3552_v1 = vor.u32 %v4043_v34, %v3551_v4  ;;  %v4060_v50 = vld [vmem:[%s5935_s5 + $0x3c4] sm:$0xf]  ;;  %v4062_v4 = vld [vmem:[%s5935_s5 + $0x3d0] sm:$0xf0] }
 0x2c9   :  { %1707 = vmatpush.bf16.msra.mxu0 %v3316_v60  ;;  %1890 = vmatpush.bf16.msra.mxu1 %v3436_v49  ;;  %v3563_v60 = vld [vmem:[%s5935_s5 + $0x348] sm:$0xf]  ;;  %v4046_v49 = vld [vmem:[%s5935_s5 + $0x350] sm:$0xf0] }
 0x2ca   :  { %2129 = vmatmul.bf16.vlgmr.msrb.gmra.mxu2 %v5592_v22  ;;  %v3564_v31 = vor.u32 %v4046_v49, %v3563_v60  ;;  %v4065_v60 = vld [vmem:[%s5935_s5 + $0x3e8] sm:$0xf0] }
 0x2cb   :  { %v1029_v57 = vpop.f32.mrf.mxu2  ;;  %v1068_v17 = vpop.f32.mrf.mxu3 }
 0x2cc   :  { %v1093_v6 = vadd.f32 %v1029_v57, %v851_v21  ;;  %v1094_v32 = vadd.f32 %v1068_v17, %v890_v5  ;;  %v3544_v21 = vor.u32 %v4039_v29, %v3541_v20  ;;  %v3527_v5 = vld [vmem:[%s5935_s5 + $0x300] sm:$0xf]  ;;  %v4037_v57 = vld [vmem:[%s5935_s5 + $0x308] sm:$0xf0]  ;;  %v4036_v17 = vld [vmem:[%s5935_s5 + $0x304] sm:$0xf] }
 0x2cd   :  { %1708 = vmatpush.bf16.msra.mxu0 %v3304_v38  ;;  %1891 = vmatpush.bf16.msra.mxu1 %v3424_v59  ;;  %v3553_v38 = vld [vmem:[%s5935_s5 + $0x33c] sm:$0xf0] }
 0x2ce   :  { %v2137_v39 = vmax.f32 %v1091_v63, %v1093_v6  ;;  %v2138_v44 = vmax.f32 %v1092_v7, %v1094_v32  ;;  %v3556_v59 = vor.u32 %v4042_v56, %v3553_v38  ;;  %v3741_v63 = vld [vmem:[%s5935_s5 + $0x474] sm:$0xf0]  ;;  %v3747_v7 = vld [vmem:[%s5935_s5 + $0x470] sm:$0xf]  ;;  %v4083_v6 = vld [vmem:[%s5935_s5 + $0x478] sm:$0xf0]  ;;  %v3528_v32 = vor.u32 %v4037_v57, %v3527_v5 }
 0x2cf   :  { %v3748_v28 = vor.u32 %v4083_v6, %v3747_v7 }
 0x2d0   :  { %v2139_v25 = vmax.f32 %v2137_v39, %v2138_v44  ;;  %v4080_v39 = vld [vmem:[%s5935_s5 + $0x460] sm:$0xf0]  ;;  %v3732_v44 = vor.u32 %v4078_v8, %v3729_v47 }
 0x2d1   :  { %1709 = vmatpush.bf16.msra.mxu0 %v3292_v24  ;;  %1892 = vmatpush.bf16.msra.mxu1 %v3412_v54  ;;  %v3529_v24 = vld [vmem:[%s5935_s5 + $0x30c] sm:$0xf0]  ;;  %v4081_v54 = vld [vmem:[%s5935_s5 + $0x46c] sm:$0xf]  ;;  %v3736_v0 = vor.u32 %v4080_v39, %v3735_v10 }
 0x2d2   :  { %v2140_v30 = vadd.f32 %v5266_v61, %v2139_v25  ;;  %v4052_v61 = vld [vmem:[%s5935_s5 + $0x380] sm:$0xf0]  ;;  %v3532_v18 = vor.u32 %v4036_v17, %v3529_v24  ;;  %v3744_v27 = vor.u32 %v4081_v54, %v3741_v63  ;;  %v3723_v25 = vld [vmem:[%s5935_s5 + $0x440] sm:$0xf]  ;;  %v4089_v39 = vld [vmem:[%s5938_s7 + $0x28] sm:$0xff] }
 0x2d3   :  { %v3588_v51 = vor.u32 %v4052_v61, %v3587_v12  ;;  %v4071_v12 = vld [vmem:[%s5935_s5 + $0x418] sm:$0xf0] }
 0x2d4   :  { %v2141_v35 = vmax.f32 %v2140_v30, 0.0  ;;  %v3711_v30 = vld [vmem:[%s5935_s5 + $0x428] sm:$0xf] }
 0x2d5   :  { %1710 = vmatpush.bf16.msra.mxu0 %v3280_v11  ;;  %1893 = vmatpush.bf16.msra.mxu1 %v3400_v43  ;;  %v3717_v11 = vld [vmem:[%s5935_s5 + $0x444] sm:$0xf0]  ;;  %v4077_v43 = vld [vmem:[%s5935_s5 + $0x448] sm:$0xf0] }
 0x2d6   :  { %v5658_v41 = vpack.c.bf16 %v2141_v35, %v2141_v35  ;;  %v4069_v35 = vld [vmem:[%s5935_s5 + $0x40c] sm:$0xf] }
 0x2d8   :  { %1711 = vmatmul.bf16.vlgmr.msra.gmra.mxu0 %v5373_v36  ;;  %1894 = vmatmul.bf16.vlgmr.msra.gmra.mxu1 %v5493_v37  ;;  %v3575_v36 = vld [vmem:[%s5935_s5 + $0x360] sm:$0xf]  ;;  %v3577_v37 = vld [vmem:[%s5935_s5 + $0x36c] sm:$0xf0] }
 0x2d9   :  { %2095 = vmatpush.bf16.msrb.mxu0 %v3612_v13  ;;  %2108 = vmatpush.bf16.msrb.mxu1 %v3616_v42  ;;  %v3576_v3 = vor.u32 %v4049_v52, %v3575_v36  ;;  %v3580_v16 = vor.u32 %v4048_v53, %v3577_v37  ;;  %v3720_v13 = vor.u32 %v4075_v58, %v3717_v11  ;;  %v4068_v36 = vld [vmem:[%s5935_s5 + $0x400] sm:$0xf0]  ;;  %v4063_v37 = vld [vmem:[%s5935_s5 + $0x3dc] sm:$0xf] }
 0x2da   :  { %2312 = vmatmul.bf16.vlgmr.msrb.gmra.mxu3 %v5658_v41  ;;  %v3724_v42 = vor.u32 %v4077_v43, %v3723_v25  ;;  %v4088_v58 = vld [vmem:[%s5938_s7 + $0x20] sm:$0xff]  ;;  %v4087_v11 = vld [vmem:[%s5938_s7 + $0x18] sm:$0xff]  ;;  %v4086_v43 = vld [vmem:[%s5938_s7 + $0x10] sm:$0xff] }
 0x2dd   :  { %2096 = vmatpush.bf16.msrb.mxu0 %v3600_v55  ;;  %2109 = vmatpush.bf16.msrb.mxu1 %v3604_v45  ;;  %v3693_v55 = vld [vmem:[%s5935_s5 + $0x414] sm:$0xf0]  ;;  %v3699_v45 = vld [vmem:[%s5935_s5 + $0x410] sm:$0xf] }
 0x2de   :  { %v3696_v61 = vor.u32 %v4069_v35, %v3693_v55  ;;  %v3700_v14 = vor.u32 %v4071_v12, %v3699_v45  ;;  %v4098_v35 = vld [vmem:[%s5938_s7 + $0x70] sm:$0xff] }
 0x2e1   :  { %2097 = vmatpush.bf16.msrb.mxu0 %v3588_v51  ;;  %2110 = vmatpush.bf16.msrb.mxu1 %v3592_v33  ;;  %v3681_v51 = vld [vmem:[%s5935_s5 + $0x3fc] sm:$0xf0]  ;;  %v3687_v33 = vld [vmem:[%s5935_s5 + $0x3f8] sm:$0xf] }
 0x2e2   :  { %v3684_v52 = vor.u32 %v4066_v40, %v3681_v51  ;;  %v3688_v53 = vor.u32 %v4068_v36, %v3687_v33  ;;  %v4102_v40 = vld [vmem:[%s5938_s7 + $0x90] sm:$0xff]  ;;  %v4096_v51 = vld [vmem:[%s5938_s7 + $0x60] sm:$0xff]  ;;  %v4095_v36 = vld [vmem:[%s5938_s7 + $0x58] sm:$0xff] }
 0x2e5   :  { %2098 = vmatpush.bf16.msrb.mxu0 %v3576_v3  ;;  %2111 = vmatpush.bf16.msrb.mxu1 %v3580_v16  ;;  %v3669_v3 = vld [vmem:[%s5935_s5 + $0x3e4] sm:$0xf0]  ;;  %v3675_v16 = vld [vmem:[%s5935_s5 + $0x3e0] sm:$0xf] }
 0x2e6   :  { %v3672_v49 = vor.u32 %v4063_v37, %v3669_v3  ;;  %v3676_v9 = vor.u32 %v4065_v60, %v3675_v16  ;;  %v2346_v37 = vld [vmem:[%s5939_s6] sm:$0x7]  ;;  %v4093_v3 = vld [vmem:[%s5938_s7 + $0x48] sm:$0xff] }
 0x2e7   :  { %v4101_v16 = vld [vmem:[%s5938_s7 + $0x88] sm:$0xff] }
 0x2e9   :  { %2099 = vmatpush.bf16.msrb.mxu0 %v3564_v31  ;;  %2112 = vmatpush.bf16.msrb.mxu1 %v3568_v19  ;;  %v3657_v31 = vld [vmem:[%s5935_s5 + $0x3cc] sm:$0xf0]  ;;  %v3663_v19 = vld [vmem:[%s5935_s5 + $0x3c8] sm:$0xf] }
 0x2ea   :  { %v3660_v34 = vor.u32 %v4060_v50, %v3657_v31  ;;  %v3664_v56 = vor.u32 %v4062_v4, %v3663_v19  ;;  %v2348_v50 = vperm.slane %v2346_v37, 0  ;;  %v4092_v19 = vld [vmem:[%s5938_s7 + $0x40] sm:$0xff] }
 0x2eb   :  { %v4100_v4 = vld [vmem:[%s5938_s7 + $0x80] sm:$0xff] }
 0x2ed   :  { %2100 = vmatpush.bf16.msrb.mxu0 %v3552_v1  ;;  %2113 = vmatpush.bf16.msrb.mxu1 %v3556_v59 }
 0x2f1   :  { %2101 = vmatpush.bf16.msrb.mxu0 %v3540_v26  ;;  %2114 = vmatpush.bf16.msrb.mxu1 %v3544_v21 }
 0x2f5   :  { %2102 = vmatpush.bf16.msrb.mxu0 %v3528_v32  ;;  %2115 = vmatpush.bf16.msrb.mxu1 %v3532_v18 }
 0x2f8   :  { %2103 = vmatmul.bf16.vlgmr.msrb.gmra.mxu0 %v5592_v22  ;;  %2116 = vmatmul.bf16.vlgmr.msrb.gmra.mxu1 %v5592_v22  ;;  %v4074_v22 = vld [vmem:[%s5935_s5 + $0x430] sm:$0xf0] }
 0x2f9   :  { %2317 = vmatpush.bf16.msra.mxu0 %v3744_v27  ;;  %2330 = vmatpush.bf16.msra.mxu1 %v3748_v28  ;;  %v3712_v48 = vor.u32 %v4074_v22, %v3711_v30  ;;  %v4090_v28 = vld [vmem:[%s5938_s7 + $0x30] sm:$0xff] }
 0x2fd   :  { %2318 = vmatpush.bf16.msra.mxu0 %v3732_v44  ;;  %2331 = vmatpush.bf16.msra.mxu1 %v3736_v0 }
 0x301   :  { %2319 = vmatpush.bf16.msra.mxu0 %v3720_v13  ;;  %2332 = vmatpush.bf16.msra.mxu1 %v3724_v42  ;;  %v4085_v42 = vld [vmem:[%s5938_s7 + $0x8] sm:$0xff] }
 0x305   :  { %2320 = vmatpush.bf16.msra.mxu0 %v3708_v62  ;;  %2333 = vmatpush.bf16.msra.mxu1 %v3712_v48  ;;  %v4099_v62 = vld [vmem:[%s5938_s7 + $0x78] sm:$0xff]  ;;  %v4084_v48 = vld [vmem:[%s5938_s7] sm:$0xff] }
 0x306   :  { %2544 = vmatpush.bf16.msra.mxu3 %v4099_v62 }
 0x309   :  { %2321 = vmatpush.bf16.msra.mxu0 %v3696_v61  ;;  %2334 = vmatpush.bf16.msra.mxu1 %v3700_v14  ;;  %v4097_v61 = vld [vmem:[%s5938_s7 + $0x68] sm:$0xff]  ;;  %v4103_v14 = vld [vmem:[%s5938_s7 + $0x98] sm:$0xff] }
 0x30a   :  { %2545 = vmatpush.bf16.msra.mxu3 %v4098_v35  ;;  %v4115_v35 = vld [vmem:[%s5940_s10] ss:$0 sm:$0xff] }
 0x30d   :  { %2322 = vmatpush.bf16.msra.mxu0 %v3684_v52  ;;  %2335 = vmatpush.bf16.msra.mxu1 %v3688_v53  ;;  %v4094_v52 = vld [vmem:[%s5938_s7 + $0x50] sm:$0xff] }
 0x30e   :  { %2546 = vmatpush.bf16.msra.mxu3 %v4097_v61 }
 0x311   :  { %2323 = vmatpush.bf16.msra.mxu0 %v3672_v49  ;;  %2336 = vmatpush.bf16.msra.mxu1 %v3676_v9 }
 0x312   :  { %2547 = vmatpush.bf16.msra.mxu3 %v4096_v51 }
 0x315   :  { %2324 = vmatpush.bf16.msra.mxu0 %v3660_v34  ;;  %2337 = vmatpush.bf16.msra.mxu1 %v3664_v56  ;;  %v1313_v38 = vpop.f32.mrf.mxu0  ;;  %v1326_v1 = vpop.f32.mrf.mxu1 }
 0x316   :  { %2548 = vmatpush.bf16.msra.mxu3 %v4095_v36 }
 0x318   :  { %2325 = vmatmul.bf16.vlgmr.msra.gmra.mxu0 %v5658_v41  ;;  %2338 = vmatmul.bf16.vlgmr.msra.gmra.mxu1 %v5658_v41  ;;  %v4091_v41 = vld [vmem:[%s5938_s7 + $0x38] sm:$0xff] }
 0x319   :  { %2531 = vmatpush.bf16.msra.mxu2 %v4091_v41  ;;  %2561 = vmatpush.bf16.msrb.mxu0 %v4103_v14 }
 0x31a   :  { %2549 = vmatpush.bf16.msra.mxu3 %v4094_v52 }
 0x31d   :  { %v1315_v59 = vpop.f32.mrf.mxu0  ;;  %v1328_v2 = vpop.f32.mrf.mxu1  ;;  %2532 = vmatpush.bf16.msra.mxu2 %v4090_v28  ;;  %2562 = vmatpush.bf16.msrb.mxu0 %v4102_v40  ;;  %v4110_v28 = vld [vmem:[%s5941_s9 + $0x30] sm:$0xff] }
 0x31e   :  { %2550 = vmatpush.bf16.msra.mxu3 %v4093_v3 }
 0x321   :  { %2533 = vmatpush.bf16.msra.mxu2 %v4089_v39  ;;  %2563 = vmatpush.bf16.msrb.mxu0 %v4101_v16  ;;  %v4106_v39 = vld [vmem:[%s5941_s9 + $0x10] sm:$0xff] }
 0x322   :  { %2551 = vmatpush.bf16.msra.mxu3 %v4092_v19 }
 0x325   :  { %v1339_v23 = vpop.f32.mrf.mxu0  ;;  %v1480_v29 = vpop.f32.mrf.mxu1  ;;  %2534 = vmatpush.bf16.msra.mxu2 %v4088_v58  ;;  %2564 = vmatpush.bf16.msrb.mxu0 %v4100_v4  ;;  %v4104_v58 = vld [vmem:[%s5941_s9] sm:$0xff] }
 0x326   :  { %v5829_v20 = vadd.f32 %v1480_v29, %v1313_v38  ;;  %v2349_v29 = vperm.slane %v2346_v37, 1 }
 0x329   :  { %2535 = vmatpush.bf16.msra.mxu2 %v4087_v11 }
 0x32d   :  { %v1686_v26 = vpop.f32.mrf.mxu2  ;;  %v1699_v21 = vpop.f32.mrf.mxu3  ;;  %2536 = vmatpush.bf16.msra.mxu2 %v4086_v43 }
 0x32e   :  { %v1341_v5 = vpop.f32.mrf.mxu0  ;;  %v1482_v57 = vpop.f32.mrf.mxu1  ;;  %v1716_v53 = vadd.f32 %v1686_v26, %v5829_v20 }
 0x331   :  { %2537 = vmatpush.bf16.msra.mxu2 %v4085_v42 }
 0x335   :  { %v1688_v17 = vpop.f32.mrf.mxu2  ;;  %v1701_v24 = vpop.f32.mrf.mxu3  ;;  %2538 = vmatpush.bf16.msra.mxu2 %v4084_v48 }
 0x336   :  { %v1493_v54 = vpop.f32.mrf.mxu0  ;;  %v1506_v63 = vpop.f32.mrf.mxu1 }
 0x337   :  { %v1494_v7 = vadd.f32 %v1493_v54, %v1326_v1  ;;  %v1507_v6 = vadd.f32 %v1506_v63, %v1339_v23 }
 0x339   :  { %v1717_v32 = vadd.f32 %v1699_v21, %v1494_v7  ;;  %v2350_v21 = vperm.slane %v2346_v37, 2 }
 0x33d   :  { %v1908_v18 = vpop.f32.mrf.mxu2  ;;  %v1921_v27 = vpop.f32.mrf.mxu3 }
 0x33e   :  { %v5837_v8 = vadd.f32 %v1908_v18, %v1717_v32  ;;  %v1495_v47 = vpop.f32.mrf.mxu0  ;;  %v1508_v10 = vpop.f32.mrf.mxu1 }
 0x33f   :  { %v4108_v47 = vld [vmem:[%s5941_s9 + $0x20] sm:$0xff]  ;;  %v4107_v10 = vld [vmem:[%s5941_s9 + $0x18] sm:$0xff] }
 0x345   :  { %v1910_v44 = vpop.f32.mrf.mxu2  ;;  %v1923_v0 = vpop.f32.mrf.mxu3 }
 0x346   :  { %v4105_v44 = vld [vmem:[%s5941_s9 + $0x8] sm:$0xff] }
 0x34d   :  { %v2130_v25 = vpop.f32.mrf.mxu2 }
 0x355   :  { %v1712_v13 = vpop.f32.mrf.mxu0  ;;  %v1895_v46 = vpop.f32.mrf.mxu1 }
 0x356   :  { %v1718_v15 = vadd.f32 %v1712_v13, %v1507_v6  ;;  %v2132_v22 = vpop.f32.mrf.mxu2  ;;  %v1925_v60 = vadd.f32 %v1895_v46, %v1716_v53 }
 0x358   :  { %v1927_v30 = vadd.f32 %v1921_v27, %v1718_v15  ;;  %v4111_v27 = vld [vmem:[%s5941_s9 + $0x38] sm:$0xff] }
 0x359   :  { %2640 = vmatpush.bf16.msrb.mxu1 %v4111_v27 }
 0x35a   :  { %v2136_v26 = vadd.f32 %v2130_v25, %v1927_v30  ;;  %v4114_v25 = vld [vmem:[%s5937_s8] ss:$0 sm:$0xff] }
 0x35d   :  { %v1714_v55 = vpop.f32.mrf.mxu0  ;;  %v2313_v45 = vpop.f32.mrf.mxu3  ;;  %2641 = vmatpush.bf16.msrb.mxu1 %v4110_v28 }
 0x35e   :  { %v1897_v12 = vpop.f32.mrf.mxu1 }
 0x365   :  { %v2315_v33 = vpop.f32.mrf.mxu3 }
 0x375   :  { %v2104_v49 = vpop.f32.mrf.mxu0  ;;  %v2117_v31 = vpop.f32.mrf.mxu1 }
 0x376   :  { %v2134_v9 = vadd.f32 %v2104_v49, %v1925_v60  ;;  %v2135_v23 = vadd.f32 %v2117_v31, %v5837_v8  ;;  %v4109_v8 = vld [vmem:[%s5941_s9 + $0x28] sm:$0xff] }
 0x377   :  { %2642 = vmatpush.bf16.msrb.mxu1 %v4109_v8 }
 0x378   :  { %v2343_v34 = vadd.f32 %v2313_v45, %v2134_v9 }
 0x37a   :  { %v2354_v56 = vadd.f32 %v2348_v50, %v2343_v34 }
 0x37b   :  { %2643 = vmatpush.bf16.msrb.mxu1 %v4108_v47 }
 0x37c   :  { %v2357_v38 = vmax.f32 %v2354_v56, 0.0 }
 0x37d   :  { %v2106_v1 = vpop.f32.mrf.mxu0  ;;  %v2119_v2 = vpop.f32.mrf.mxu1 }
 0x37e   :  { %v2360_v59 = vpack.c.bf16 %v2357_v38, %v2357_v38 }
 0x37f   :  { %2644 = vmatpush.bf16.msrb.mxu1 %v4107_v10 }
 0x380   :  { %2539 = vmatmul.bf16.vlgmr.msra.gmra.mxu2 %v2360_v59 }
 0x383   :  { %2645 = vmatpush.bf16.msrb.mxu1 %v4106_v39 }
 0x387   :  { %2646 = vmatpush.bf16.msrb.mxu1 %v4105_v44 }
 0x38b   :  { %2647 = vmatpush.bf16.msrb.mxu1 %v4104_v58 }
 0x395   :  { %v2326_v20 = vpop.f32.mrf.mxu0  ;;  %v2339_v57 = vpop.f32.mrf.mxu1 }
 0x396   :  { %v2344_v5 = vadd.f32 %v2326_v20, %v2135_v23  ;;  %v2345_v17 = vadd.f32 %v2339_v57, %v2136_v26 }
 0x398   :  { %v2355_v24 = vadd.f32 %v2349_v29, %v2344_v5  ;;  %v2356_v54 = vadd.f32 %v2350_v21, %v2345_v17 }
 0x39a   :  { %v2358_v63 = vmax.f32 %v2355_v24, 0.0  ;;  %v2359_v7 = vmax.f32 %v2356_v54, 0.0 }
 0x39c   :  { %v2361_v6 = vpack.c.bf16 %v2358_v63, %v2358_v63  ;;  %v2362_v32 = vpack.c.bf16 %v2359_v7, %v2359_v7 }
 0x39d   :  { %v2328_v41 = vpop.f32.mrf.mxu0  ;;  %v2341_v18 = vpop.f32.mrf.mxu1 }
 0x39e   :  { %2552 = vmatmul.bf16.vlgmr.msra.gmra.mxu3 %v2361_v6  ;;  %3829 = vmatmul.msk.bf16.vlgmr.msrb.gmra.mxu0 %vm2527_vm0, %v2362_v32 }
 0x403   :  { %v2540_v0 = vpop.f32.mrf.mxu2 }
 0x404   :  { %v2541_v13 = vadd.f32 %v4114_v25, %v2540_v0 }
 0x40b   :  { %v2542_v11 = vpop.f32.mrf.mxu2 }
 0x41b   :  { %v2566_v43 = vpop.f32.mrf.mxu0 }
 0x421   :  { %v2553_v42 = vpop.f32.mrf.mxu3 }
 0x422   :  { %v2554_v15 = vadd.f32 %v2553_v42, %v2541_v13 }
 0x423   :  { %v2568_v30 = vpop.f32.mrf.mxu0 }
 0x424   :  { %v2567_v46 = vadd.f32 %v2566_v43, %v2554_v15 }
 0x426   :  { %v2570_v22 = vmax.f32 %v2567_v46, 0.0 }
 0x428   :  { %v2571_v62 = vpack.c.bf16 %v2570_v22, %v2570_v22 }
 0x429   :  { %v2555_v48 = vpop.f32.mrf.mxu3 }
 0x42a   :  { %2648 = vmatmul.bf16.vlgmr.msrb.gmra.mxu1 %v2571_v62 }
 0x4a7   :  { %v2649_v55 = vpop.f32.mrf.mxu1 }
 0x4a8   :  { %v2650_v45 = vadd.f32 %v4115_v35, %v2649_v55 }
 0x4aa   :  { %2653 = vmax.xlane.f32.xlu0 %v2650_v45 }
 0x4af   :  { %v2651_v12 = vpop.f32.mrf.mxu1 }
 0x51d   :  { %v2654_v61 = vpop.xlane.xlu0 %2653 }
 0x51e   :  { %v2655_v14 = vsub.f32 %v2650_v45, %v2654_v61 }
 0x520   :  { %v2656_v40 = vmul.f32 1.442695, %v2655_v14 }
 0x522   :  { %4116 = vpow2.f32 %v2656_v40 }
 0x528   :  { %v4117_v51 = vpop.eup %4116 }
 0x529   :  { %2658 = vadd.xlane.f32.xlu0 %v4117_v51 }
 0x59c   :  { %v2659_v33 = vpop.xlane.xlu0 %2658 }
 0x59d   :  { %4118 = vlog2.f32 %v2659_v33 }
 0x5a3   :  { %v4119_v36 = vpop.eup %4118 }
 0x5a4   :  { %v2661_v52 = vmul.f32 0.6931472, %v4119_v36 }
 0x5a6   :  { %v2662_v53 = vadd.f32 %v2661_v52, %v2654_v61 }
 0x5a8   :  { %v2663_v37 = vsub.f32 %v2650_v45, %v2662_v53 }
 0x5aa   :  { %2664 = vst [vmem:[%s5942_s11] sm:$0xff] %v2663_v37 }

</bundles_post_ra>
